<compile_context>
chip_gen: v7x
topology: tpu7x:2x2x1
jax: 0.10.0
libtpu: 0.0.40
codegen_flags: <defaults>
</compile_context>

<pallas_src>
import functools

import numpy as np
import jax
import jax.numpy as jnp
from jax.experimental import pallas as pl
from jax.experimental.pallas import tpu as pltpu

LEAK = 0.2
EPS = 1e-5                      # nn.BatchNorm2d default
VMEM_LIMIT = 32 * 1024 * 1024   # safe on v5e/v6e (128 MiB phys) and v7x (64 MiB)


def _round_up(x, m):
    return (x + m - 1) // m * m


# --------------------------------------------------------------------------
# Kernels
# --------------------------------------------------------------------------
def _matmul_bias_lrelu_kernel(x_ref, w_ref, b_ref, o_ref, acc_ref):
    """out = leaky_relu(x @ w + b).  K is the innermost reduction grid axis."""
    k = pl.program_id(2)

    @pl.when(k == 0)
    def _():
        acc_ref[...] = jnp.zeros_like(acc_ref)

    acc_ref[...] += jnp.dot(x_ref[...], w_ref[...],
                            preferred_element_type=jnp.float32)

    @pl.when(k == pl.num_programs(2) - 1)
    def _():
        y = acc_ref[...] + b_ref[...]
        o_ref[...] = jnp.where(y >= 0, y, LEAK * y).astype(o_ref.dtype)


def _matmul_stats_kernel(x_ref, w_ref, o_ref, stats_ref, acc_ref):
    """raw = x @ w (pre-BN), plus per-channel sum / sum-of-squares.

    Grid = (Cout tiles j, M tiles i, K tiles k).  The stats block index only
    depends on j, so it stays VMEM-resident across the whole (i, k) sweep of a
    given Cout tile (both axes marked "arbitrary").
    """
    i = pl.program_id(1)
    k = pl.program_id(2)

    @pl.when(k == 0)
    def _():
        acc_ref[...] = jnp.zeros_like(acc_ref)

    @pl.when(jnp.logical_and(i == 0, k == 0))
    def _():
        stats_ref[...] = jnp.zeros_like(stats_ref)

    acc_ref[...] += jnp.dot(x_ref[...], w_ref[...],
                            preferred_element_type=jnp.float32)

    @pl.when(k == pl.num_programs(2) - 1)
    def _():
        acc = acc_ref[...]
        o_ref[...] = acc.astype(o_ref.dtype)
        stats_ref[0:1, :] += jnp.sum(acc, axis=0, keepdims=True)
        stats_ref[1:2, :] += jnp.sum(acc * acc, axis=0, keepdims=True)


def _make_bn_lrelu_kernel(m_true):
    """Epilogue: full-batch BN (from sum/sumsq), affine, LeakyReLU(0.2)."""
    inv_m = 1.0 / float(m_true)

    def kernel(y_ref, stats_ref, g_ref, bt_ref, o_ref):
        mean = stats_ref[0:1, :] * inv_m
        var = jnp.maximum(stats_ref[1:2, :] * inv_m - mean * mean, 0.0)
        scale = jax.lax.rsqrt(var + EPS) * g_ref[...]   # gamma=0 on padded lanes
        shift = bt_ref[...] - mean * scale
        y = y_ref[...].astype(jnp.float32) * scale + shift
        o_ref[...] = jnp.where(y >= 0, y, LEAK * y).astype(o_ref.dtype)

    return kernel


# --------------------------------------------------------------------------
# Per-layer wrapper
# --------------------------------------------------------------------------
def _im2col(x_nhwc, KH, KW, stride, pad, dtype):
    """Patch extraction (glue). Rows = N*Ho*Wo, cols = (kh, kw, c_in)."""
    N, H, W, Cin = x_nhwc.shape
    Ho = (H + 2 * pad - KH) // stride + 1
    Wo = (W + 2 * pad - KW) // stride + 1
    xp = jnp.pad(x_nhwc, ((0, 0), (pad, pad), (pad, pad), (0, 0)))
    taps = []
    for kh in range(KH):
        for kw in range(KW):
            taps.append(xp[:, kh:kh + stride * Ho:stride,
                           kw:kw + stride * Wo:stride, :])
    patches = jnp.stack(taps, axis=3)                   # (N, Ho, Wo, KH*KW, Cin)
    return patches.reshape(N * Ho * Wo, KH * KW * Cin).astype(dtype), Ho, Wo


def conv_bn_lrelu(x_nhwc, w_hwio, bias, gamma, beta, use_bn, out_dtype):
    """One Conv2d(k=4, s=2, p=1) [+ training-mode BN] + LeakyReLU(0.2)."""
    N = x_nhwc.shape[0]
    KH, KW, _, Cout = w_hwio.shape
    stride, pad = 2, 1

    # Glue: im2col + bf16 cast (bf16 MXU, half the HBM traffic).
    # TODO(synk): remove the im2col duplication (see header note).
    x_cols, Ho, Wo = _im2col(x_nhwc, KH, KW, stride, pad, jnp.bfloat16)
    M, Kdim = x_cols.shape
    w_mat = w_hwio.reshape(Kdim, Cout).astype(jnp.bfloat16)

    # Lane / tile padding: zero pads are exact no-ops for matmul and stats.
    Kp = _round_up(Kdim, 128)
    Cp = _round_up(Cout, 128)
    tk = 512 if Kp % 512 == 0 else (256 if Kp % 256 == 0 else 128)
    tn = 256 if Cp % 256 == 0 else 128
    tm = 512 if M >= 512 else _round_up(M, 8)
    Mp = _round_up(M, tm)

    x_pad = jnp.pad(x_cols, ((0, Mp - M), (0, Kp - Kdim)))
    w_pad = jnp.pad(w_mat, ((0, Kp - Kdim), (0, Cp - Cout)))

    ni, nj, nk = Mp // tm, Cp // tn, Kp // tk
    out_bytes = np.dtype(out_dtype).itemsize
    mm_flops = 2 * Mp * Kp * Cp

    if not use_bn:
        # Fused matmul + bias + LeakyReLU (layer 1).
        b_pad = jnp.pad(bias.astype(jnp.float32), (0, Cp - Cout)).reshape(1, Cp)
        y = pl.pallas_call(
            _matmul_bias_lrelu_kernel,
            out_shape=jax.ShapeDtypeStruct((Mp, Cp), out_dtype),
            grid_spec=pltpu.PrefetchScalarGridSpec(
                num_scalar_prefetch=0,
                grid=(ni, nj, nk),
                in_specs=[
                    pl.BlockSpec((tm, tk), lambda i, j, k: (i, k)),
                    pl.BlockSpec((tk, tn), lambda i, j, k: (k, j)),
                    pl.BlockSpec((1, tn), lambda i, j, k: (0, j)),
                ],
                out_specs=pl.BlockSpec((tm, tn), lambda i, j, k: (i, j)),
                scratch_shapes=[pltpu.VMEM((tm, tn), jnp.float32)],
            ),
            compiler_params=pltpu.CompilerParams(
                dimension_semantics=("parallel", "parallel", "arbitrary"),
                vmem_limit_bytes=VMEM_LIMIT),
            cost_estimate=pl.CostEstimate(
                flops=mm_flops, transcendentals=0,
                bytes_accessed=Mp * Kp * 2 + Kp * Cp * 2 + Mp * Cp * out_bytes),
        )(x_pad, w_pad, b_pad)
    else:
        # Conv bias dropped: BN's mean subtraction cancels it exactly.
        g_pad = jnp.pad(gamma.astype(jnp.float32), (0, Cp - Cout)).reshape(1, Cp)
        bt_pad = jnp.pad(beta.astype(jnp.float32), (0, Cp - Cout)).reshape(1, Cp)

        # Pass 1: tiled matmul + per-channel sum / sumsq accumulation.
        raw, stats = pl.pallas_call(
            _matmul_stats_kernel,
            out_shape=(jax.ShapeDtypeStruct((Mp, Cp), jnp.float32),
                       jax.ShapeDtypeStruct((2, Cp), jnp.float32)),
            grid_spec=pltpu.PrefetchScalarGridSpec(
                num_scalar_prefetch=0,
                grid=(nj, ni, nk),      # Cout tiles outermost; (i, k) reduce stats
                in_specs=[
                    pl.BlockSpec((tm, tk), lambda j, i, k: (i, k)),
                    pl.BlockSpec((tk, tn), lambda j, i, k: (k, j)),
                ],
                out_specs=(
                    pl.BlockSpec((tm, tn), lambda j, i, k: (i, j)),
                    pl.BlockSpec((2, tn), lambda j, i, k: (0, j)),
                ),
                scratch_shapes=[pltpu.VMEM((tm, tn), jnp.float32)],
            ),
            compiler_params=pltpu.CompilerParams(
                dimension_semantics=("parallel", "arbitrary", "arbitrary"),
                vmem_limit_bytes=VMEM_LIMIT),
            cost_estimate=pl.CostEstimate(
                flops=mm_flops + 3 * Mp * Cp, transcendentals=0,
                bytes_accessed=Mp * Kp * 2 + Kp * Cp * 2 + Mp * Cp * 4),
        )(x_pad, w_pad)

        # Pass 2: BN normalize + affine + LeakyReLU (mem-bound epilogue).
        y = pl.pallas_call(
            _make_bn_lrelu_kernel(M),   # divide by TRUE rows; padded rows are 0
            out_shape=jax.ShapeDtypeStruct((Mp, Cp), out_dtype),
            grid_spec=pltpu.PrefetchScalarGridSpec(
                num_scalar_prefetch=0,
                grid=(ni, nj),
                in_specs=[
                    pl.BlockSpec((tm, tn), lambda i, j: (i, j)),
                    pl.BlockSpec((2, tn), lambda i, j: (0, j)),
                    pl.BlockSpec((1, tn), lambda i, j: (0, j)),
                    pl.BlockSpec((1, tn), lambda i, j: (0, j)),
                ],
                out_specs=pl.BlockSpec((tm, tn), lambda i, j: (i, j)),
            ),
            compiler_params=pltpu.CompilerParams(
                dimension_semantics=("parallel", "parallel"),
                vmem_limit_bytes=VMEM_LIMIT),
            cost_estimate=pl.CostEstimate(
                flops=6 * Mp * Cp, transcendentals=Cp * ni,
                bytes_accessed=Mp * Cp * 4 + Mp * Cp * out_bytes),
        )(raw, stats, g_pad, bt_pad)

    return y[:M, :Cout].reshape(N, Ho, Wo, Cout)


# --------------------------------------------------------------------------
# Model wrapper
# --------------------------------------------------------------------------
def init_params(d=8, seed=0):
    """Deterministic parameter init (normal, std=0.02, like weight_init)."""
    key = jax.random.PRNGKey(seed)
    chans = [3, d, 2 * d, 4 * d, 8 * d]
    params, bn_flags = [], []
    for i in range(4):
        cin, cout = chans[i], chans[i + 1]
        key, kw, kb = jax.random.split(key, 3)
        w = 0.02 * jax.random.normal(kw, (4, 4, cin, cout), jnp.float32)  # HWIO
        b = 0.02 * jax.random.normal(kb, (cout,), jnp.float32)
        gamma = jnp.ones((cout,), jnp.float32)
        beta = jnp.zeros((cout,), jnp.float32)
        params.append((w, b, gamma, beta))
        bn_flags.append(i > 0)              # conv1 has no BN
    return params, tuple(bn_flags)


@functools.partial(jax.jit, static_argnames=("bn_flags",))
def feature_extractor_forward(x_nchw, params, bn_flags):
    # PyTorch input is NCHW; kernels run NHWC.
    x = jnp.transpose(x_nchw, (0, 2, 3, 1)).astype(jnp.float32)
    n = len(params)
    for li, ((w, b, g, bt), use_bn) in enumerate(zip(params, bn_flags)):
        out_dtype = jnp.float32 if li == n - 1 else jnp.bfloat16
        x = conv_bn_lrelu(x, w, b, g, bt, use_bn, out_dtype)
    return jnp.transpose(x, (0, 3, 1, 2))   # back to NCHW


if __name__ == "__main__":
    d = 8  # small stand-in for the default d=128
    params, bn_flags = init_params(d=d, seed=0)
    x = jax.random.normal(jax.random.PRNGKey(0), (2, 3, 32, 32), jnp.float32)

    out = feature_extractor_forward(x, params, bn_flags)
    out = jax.block_until_ready(out)
    assert out.shape == (2, 8 * d, 2, 2), out.shape
    assert bool(jnp.all(jnp.isfinite(out)))
    print("KERNEL_OK")
</pallas_src>

<mosaic_0001>
module attributes {stable_mosaic.version = 11 : i64} {
  func.func @_matmul_bias_lrelu_kernel(%arg0: i32, %arg1: i32, %arg2: i32, %arg3: memref<512x128xbf16, #tpu.memory_space<vmem>>, %arg4: memref<128x128xbf16, #tpu.memory_space<vmem>>, %arg5: memref<1x128xf32, #tpu.memory_space<vmem>>, %arg6: memref<512x128xbf16, #tpu.memory_space<vmem>>, %arg7: memref<512x128xf32, #tpu.memory_space<vmem>>) attributes {dimension_semantics = [#tpu.dimension_semantics<parallel>, #tpu.dimension_semantics<parallel>, #tpu.dimension_semantics<arbitrary>], iteration_bounds = array<i64: 1, 1, 1>, scalar_prefetch = 0 : i64, scratch_operands = 1 : i64, tpu.core_type = #tpu.core_type<tc>, window_params = [{transform_indices = @transform_0, window_bounds = array<i64: 512, 128>}, {transform_indices = @transform_1, window_bounds = array<i64: 128, 128>}, {transform_indices = @transform_2, window_bounds = array<i64: 1, 128>}, {transform_indices = @transform_3, window_bounds = array<i64: 512, 128>}]} {
    %c0_i32 = arith.constant 0 : i32
    %0 = arith.cmpi eq, %arg2, %c0_i32 : i32
    %1 = arith.extui %0 : i1 to i32
    %c0_i32_0 = arith.constant 0 : i32
    %2 = arith.cmpi ne, %1, %c0_i32_0 : i32
    scf.if %2 {
      %cst_10 = arith.constant 0.000000e+00 : f32
      %12 = vector.broadcast %cst_10 : f32 to vector<512x128xf32>
      %c0_11 = arith.constant 0 : index
      %c0_12 = arith.constant 0 : index
      %13 = vector.load %arg7[%c0_11, %c0_12] : memref<512x128xf32, #tpu.memory_space<vmem>>, vector<512x128xf32>
      tpu.vector_store %arg7[%c0_11, %c0_12], %12 {strides = array<i32>} : memref<512x128xf32, #tpu.memory_space<vmem>>, vector<512x128xf32>,
    } else {
    }
    %c0 = arith.constant 0 : index
    %c0_1 = arith.constant 0 : index
    %3 = vector.load %arg7[%c0, %c0_1] : memref<512x128xf32, #tpu.memory_space<vmem>>, vector<512x128xf32>
    %c0_2 = arith.constant 0 : index
    %c0_3 = arith.constant 0 : index
    %4 = vector.load %arg3[%c0_2, %c0_3] : memref<512x128xbf16, #tpu.memory_space<vmem>>, vector<512x128xbf16>
    %c0_4 = arith.constant 0 : index
    %c0_5 = arith.constant 0 : index
    %5 = vector.load %arg4[%c0_4, %c0_5] : memref<128x128xbf16, #tpu.memory_space<vmem>>, vector<128x128xbf16>
    %cst = arith.constant dense<0.000000e+00> : vector<512x128xf32>
    %6 = tpu.matmul %4, %5, %cst {dimension_numbers = #tpu.dot_dimension_numbers<[1], [0], [0], [1], [0, 0, 1, 1], [], []>} : vector<512x128xbf16>, vector<128x128xbf16>, vector<512x128xf32> -> vector<512x128xf32>
    %7 = arith.addf %3, %6 : vector<512x128xf32>
    %c0_6 = arith.constant 0 : index
    %c0_7 = arith.constant 0 : index
    %8 = vector.load %arg7[%c0_6, %c0_7] : memref<512x128xf32, #tpu.memory_space<vmem>>, vector<512x128xf32>
    tpu.vector_store %arg7[%c0_6, %c0_7], %7 {strides = array<i32>} : memref<512x128xf32, #tpu.memory_space<vmem>>, vector<512x128xf32>,
    %c0_i32_8 = arith.constant 0 : i32
    %9 = arith.cmpi eq, %arg2, %c0_i32_8 : i32
    %10 = arith.extui %9 : i1 to i32
    %c0_i32_9 = arith.constant 0 : i32
    %11 = arith.cmpi ne, %10, %c0_i32_9 : i32
    scf.if %11 {
      %c0_10 = arith.constant 0 : index
      %c0_11 = arith.constant 0 : index
      %12 = vector.load %arg7[%c0_10, %c0_11] : memref<512x128xf32, #tpu.memory_space<vmem>>, vector<512x128xf32>
      %c0_12 = arith.constant 0 : index
      %c0_13 = arith.constant 0 : index
      %13 = vector.load %arg5[%c0_12, %c0_13] : memref<1x128xf32, #tpu.memory_space<vmem>>, vector<1x128xf32>
      %14 = vector.broadcast %13 : vector<1x128xf32> to vector<512x128xf32>
      %15 = arith.addf %12, %14 : vector<512x128xf32>
      %cst_14 = arith.constant 0.000000e+00 : f32
      %16 = vector.broadcast %cst_14 : f32 to vector<512x128xf32>
      %17 = arith.cmpf oge, %15, %16 : vector<512x128xf32>
      %cst_15 = arith.constant 2.000000e-01 : f32
      %18 = vector.broadcast %cst_15 : f32 to vector<512x128xf32>
      %19 = arith.mulf %18, %15 : vector<512x128xf32>
      %20 = arith.select %17, %15, %19 : vector<512x128xi1>, vector<512x128xf32>
      %21 = arith.truncf %20 : vector<512x128xf32> to vector<512x128xbf16>
      %c0_16 = arith.constant 0 : index
      %c0_17 = arith.constant 0 : index
      %22 = vector.load %arg6[%c0_16, %c0_17] : memref<512x128xbf16, #tpu.memory_space<vmem>>, vector<512x128xbf16>
      tpu.vector_store %arg6[%c0_16, %c0_17], %21 {strides = array<i32>} : memref<512x128xbf16, #tpu.memory_space<vmem>>, vector<512x128xbf16>,
    } else {
    }
    return
  }
  func.func @transform_0(%arg0: i32, %arg1: i32, %arg2: i32) -> (i32, i32) {
    %c0_i32 = arith.constant 0 : i32
    return %arg0, %arg2 : i32, i32
  }
  func.func @transform_1(%arg0: i32, %arg1: i32, %arg2: i32) -> (i32, i32) {
    %c0_i32 = arith.constant 0 : i32
    return %arg2, %arg1 : i32, i32
  }
  func.func @transform_2(%arg0: i32, %arg1: i32, %arg2: i32) -> (i32, i32) {
    %c0_i32 = arith.constant 0 : i32
    %c0_i32_0 = arith.constant 0 : i32
    return %c0_i32, %arg1 : i32, i32
  }
  func.func @transform_3(%arg0: i32, %arg1: i32, %arg2: i32) -> (i32, i32) {
    %c0_i32 = arith.constant 0 : i32
    return %arg0, %arg1 : i32, i32
  }
}

module attributes {stable_mosaic.version = 11 : i64} {
  func.func @_matmul_stats_kernel(%arg0: i32, %arg1: i32, %arg2: i32, %arg3: memref<128x128xbf16, #tpu.memory_space<vmem>>, %arg4: memref<128x128xbf16, #tpu.memory_space<vmem>>, %arg5: memref<128x128xf32, #tpu.memory_space<vmem>>, %arg6: memref<2x128xf32, #tpu.memory_space<vmem>>, %arg7: memref<128x128xf32, #tpu.memory_space<vmem>>) attributes {dimension_semantics = [#tpu.dimension_semantics<parallel>, #tpu.dimension_semantics<arbitrary>, #tpu.dimension_semantics<arbitrary>], iteration_bounds = array<i64: 1, 1, 1>, scalar_prefetch = 0 : i64, scratch_operands = 1 : i64, tpu.core_type = #tpu.core_type<tc>, window_params = [{transform_indices = @transform_0, window_bounds = array<i64: 128, 128>}, {transform_indices = @transform_1, window_bounds = array<i64: 128, 128>}, {transform_indices = @transform_2, window_bounds = array<i64: 128, 128>}, {transform_indices = @transform_3, window_bounds = array<i64: 2, 128>}]} {
    %c0_i32 = arith.constant 0 : i32
    %0 = arith.cmpi eq, %arg2, %c0_i32 : i32
    %1 = arith.extui %0 : i1 to i32
    %c0_i32_0 = arith.constant 0 : i32
    %2 = arith.cmpi ne, %1, %c0_i32_0 : i32
    scf.if %2 {
      %cst_13 = arith.constant 0.000000e+00 : f32
      %17 = vector.broadcast %cst_13 : f32 to vector<128x128xf32>
      %c0_14 = arith.constant 0 : index
      %c0_15 = arith.constant 0 : index
      %18 = vector.load %arg7[%c0_14, %c0_15] : memref<128x128xf32, #tpu.memory_space<vmem>>, vector<128x128xf32>
      tpu.vector_store %arg7[%c0_14, %c0_15], %17 {strides = array<i32>} : memref<128x128xf32, #tpu.memory_space<vmem>>, vector<128x128xf32>,
    } else {
    }
    %c0_i32_1 = arith.constant 0 : i32
    %3 = arith.cmpi eq, %arg1, %c0_i32_1 : i32
    %c0_i32_2 = arith.constant 0 : i32
    %4 = arith.cmpi eq, %arg2, %c0_i32_2 : i32
    %5 = arith.andi %3, %4 : i1
    %6 = arith.extui %5 : i1 to i32
    %c0_i32_3 = arith.constant 0 : i32
    %7 = arith.cmpi ne, %6, %c0_i32_3 : i32
    scf.if %7 {
      %cst_13 = arith.constant 0.000000e+00 : f32
      %17 = vector.broadcast %cst_13 : f32 to vector<2x128xf32>
      %c0_14 = arith.constant 0 : index
      %c0_15 = arith.constant 0 : index
      %18 = vector.load %arg6[%c0_14, %c0_15] : memref<2x128xf32, #tpu.memory_space<vmem>>, vector<2x128xf32>
      tpu.vector_store %arg6[%c0_14, %c0_15], %17 {strides = array<i32>} : memref<2x128xf32, #tpu.memory_space<vmem>>, vector<2x128xf32>,
    } else {
    }
    %c0 = arith.constant 0 : index
    %c0_4 = arith.constant 0 : index
    %8 = vector.load %arg7[%c0, %c0_4] : memref<128x128xf32, #tpu.memory_space<vmem>>, vector<128x128xf32>
    %c0_5 = arith.constant 0 : index
    %c0_6 = arith.constant 0 : index
    %9 = vector.load %arg3[%c0_5, %c0_6] : memref<128x128xbf16, #tpu.memory_space<vmem>>, vector<128x128xbf16>
    %c0_7 = arith.constant 0 : index
    %c0_8 = arith.constant 0 : index
    %10 = vector.load %arg4[%c0_7, %c0_8] : memref<128x128xbf16, #tpu.memory_space<vmem>>, vector<128x128xbf16>
    %cst = arith.constant dense<0.000000e+00> : vector<128x128xf32>
    %11 = tpu.matmul %9, %10, %cst {dimension_numbers = #tpu.dot_dimension_numbers<[1], [0], [0], [1], [0, 0, 1, 1], [], []>} : vector<128x128xbf16>, vector<128x128xbf16>, vector<128x128xf32> -> vector<128x128xf32>
    %12 = arith.addf %8, %11 : vector<128x128xf32>
    %c0_9 = arith.constant 0 : index
    %c0_10 = arith.constant 0 : index
    %13 = vector.load %arg7[%c0_9, %c0_10] : memref<128x128xf32, #tpu.memory_space<vmem>>, vector<128x128xf32>
    tpu.vector_store %arg7[%c0_9, %c0_10], %12 {strides = array<i32>} : memref<128x128xf32, #tpu.memory_space<vmem>>, vector<128x128xf32>,
    %c0_i32_11 = arith.constant 0 : i32
    %14 = arith.cmpi eq, %arg2, %c0_i32_11 : i32
    %15 = arith.extui %14 : i1 to i32
    %c0_i32_12 = arith.constant 0 : i32
    %16 = arith.cmpi ne, %15, %c0_i32_12 : i32
    scf.if %16 {
      %c0_13 = arith.constant 0 : index
      %c0_14 = arith.constant 0 : index
      %17 = vector.load %arg7[%c0_13, %c0_14] : memref<128x128xf32, #tpu.memory_space<vmem>>, vector<128x128xf32>
      %c0_15 = arith.constant 0 : index
      %c0_16 = arith.constant 0 : index
      %18 = vector.load %arg5[%c0_15, %c0_16] : memref<128x128xf32, #tpu.memory_space<vmem>>, vector<128x128xf32>
      tpu.vector_store %arg5[%c0_15, %c0_16], %17 {strides = array<i32>} : memref<128x128xf32, #tpu.memory_space<vmem>>, vector<128x128xf32>,
      %c0_17 = arith.constant 0 : index
      %c0_18 = arith.constant 0 : index
      %19 = vector.load %arg6[%c0_17, %c0_18] : memref<2x128xf32, #tpu.memory_space<vmem>>, vector<1x128xf32>
      %cst_19 = arith.constant dense<0.000000e+00> : vector<128xf32>
      %20 = vector.multi_reduction <add>, %17, %cst_19 [0] : vector<128x128xf32> to vector<128xf32>
      %21 = vector.shape_cast %20 : vector<128xf32> to vector<1x128xf32>
      %22 = arith.addf %19, %21 : vector<1x128xf32>
      %c0_20 = arith.constant 0 : index
      %c0_21 = arith.constant 0 : index
      %23 = vector.load %arg6[%c0_20, %c0_21] : memref<2x128xf32, #tpu.memory_space<vmem>>, vector<1x128xf32>
      tpu.vector_store %arg6[%c0_20, %c0_21], %22 {strides = array<i32>} : memref<2x128xf32, #tpu.memory_space<vmem>>, vector<1x128xf32>,
      %c1 = arith.constant 1 : index
      %c0_22 = arith.constant 0 : index
      %24 = vector.load %arg6[%c1, %c0_22] : memref<2x128xf32, #tpu.memory_space<vmem>>, vector<1x128xf32>
      %25 = arith.mulf %17, %17 : vector<128x128xf32>
      %cst_23 = arith.constant dense<0.000000e+00> : vector<128xf32>
      %26 = vector.multi_reduction <add>, %25, %cst_23 [0] : vector<128x128xf32> to vector<128xf32>
      %27 = vector.shape_cast %26 : vector<128xf32> to vector<1x128xf32>
      %28 = arith.addf %24, %27 : vector<1x128xf32>
      %c1_24 = arith.constant 1 : index
      %c0_25 = arith.constant 0 : index
      %29 = vector.load %arg6[%c1_24, %c0_25] : memref<2x128xf32, #tpu.memory_space<vmem>>, vector<1x128xf32>
      tpu.vector_store %arg6[%c1_24, %c0_25], %28 {strides = array<i32>} : memref<2x128xf32, #tpu.memory_space<vmem>>, vector<1x128xf32>,
    } else {
    }
    return
  }
  func.func @transform_0(%arg0: i32, %arg1: i32, %arg2: i32) -> (i32, i32) {
    %c0_i32 = arith.constant 0 : i32
    return %arg1, %arg2 : i32, i32
  }
  func.func @transform_1(%arg0: i32, %arg1: i32, %arg2: i32) -> (i32, i32) {
    %c0_i32 = arith.constant 0 : i32
    return %arg2, %arg0 : i32, i32
  }
  func.func @transform_2(%arg0: i32, %arg1: i32, %arg2: i32) -> (i32, i32) {
    %c0_i32 = arith.constant 0 : i32
    return %arg1, %arg0 : i32, i32
  }
  func.func @transform_3(%arg0: i32, %arg1: i32, %arg2: i32) -> (i32, i32) {
    %c0_i32 = arith.constant 0 : i32
    %c0_i32_0 = arith.constant 0 : i32
    return %c0_i32, %arg0 : i32, i32
  }
}

module attributes {stable_mosaic.version = 11 : i64} {
  func.func @kernel(%arg0: i32, %arg1: i32, %arg2: memref<128x128xf32, #tpu.memory_space<vmem>>, %arg3: memref<2x128xf32, #tpu.memory_space<vmem>>, %arg4: memref<1x128xf32, #tpu.memory_space<vmem>>, %arg5: memref<1x128xf32, #tpu.memory_space<vmem>>, %arg6: memref<128x128xbf16, #tpu.memory_space<vmem>>) attributes {dimension_semantics = [#tpu.dimension_semantics<parallel>, #tpu.dimension_semantics<parallel>], iteration_bounds = array<i64: 1, 1>, scalar_prefetch = 0 : i64, scratch_operands = 0 : i64, tpu.core_type = #tpu.core_type<tc>, window_params = [{transform_indices = @transform_0, window_bounds = array<i64: 128, 128>}, {transform_indices = @transform_1, window_bounds = array<i64: 2, 128>}, {transform_indices = @transform_2, window_bounds = array<i64: 1, 128>}, {transform_indices = @transform_3, window_bounds = array<i64: 1, 128>}, {transform_indices = @transform_4, window_bounds = array<i64: 128, 128>}]} {
    %c0 = arith.constant 0 : index
    %c0_0 = arith.constant 0 : index
    %0 = vector.load %arg3[%c0, %c0_0] : memref<2x128xf32, #tpu.memory_space<vmem>>, vector<1x128xf32>
    %cst = arith.constant 7.812500e-03 : f32
    %1 = vector.broadcast %cst : f32 to vector<1x128xf32>
    %2 = arith.mulf %0, %1 : vector<1x128xf32>
    %c1 = arith.constant 1 : index
    %c0_1 = arith.constant 0 : index
    %3 = vector.load %arg3[%c1, %c0_1] : memref<2x128xf32, #tpu.memory_space<vmem>>, vector<1x128xf32>
    %cst_2 = arith.constant 7.812500e-03 : f32
    %4 = vector.broadcast %cst_2 : f32 to vector<1x128xf32>
    %5 = arith.mulf %3, %4 : vector<1x128xf32>
    %6 = arith.mulf %2, %2 : vector<1x128xf32>
    %7 = arith.subf %5, %6 : vector<1x128xf32>
    %cst_3 = arith.constant 0.000000e+00 : f32
    %8 = vector.broadcast %cst_3 : f32 to vector<1x128xf32>
    %9 = arith.maximumf %7, %8 : vector<1x128xf32>
    %cst_4 = arith.constant 9.99999974E-6 : f32
    %10 = vector.broadcast %cst_4 : f32 to vector<1x128xf32>
    %11 = arith.addf %9, %10 : vector<1x128xf32>
    %12 = math.rsqrt %11 : vector<1x128xf32>
    %c0_5 = arith.constant 0 : index
    %c0_6 = arith.constant 0 : index
    %13 = vector.load %arg4[%c0_5, %c0_6] : memref<1x128xf32, #tpu.memory_space<vmem>>, vector<1x128xf32>
    %14 = arith.mulf %12, %13 : vector<1x128xf32>
    %c0_7 = arith.constant 0 : index
    %c0_8 = arith.constant 0 : index
    %15 = vector.load %arg5[%c0_7, %c0_8] : memref<1x128xf32, #tpu.memory_space<vmem>>, vector<1x128xf32>
    %16 = arith.mulf %2, %14 : vector<1x128xf32>
    %17 = arith.subf %15, %16 : vector<1x128xf32>
    %c0_9 = arith.constant 0 : index
    %c0_10 = arith.constant 0 : index
    %18 = vector.load %arg2[%c0_9, %c0_10] : memref<128x128xf32, #tpu.memory_space<vmem>>, vector<128x128xf32>
    %19 = vector.broadcast %14 : vector<1x128xf32> to vector<128x128xf32>
    %20 = arith.mulf %18, %19 : vector<128x128xf32>
    %21 = vector.broadcast %17 : vector<1x128xf32> to vector<128x128xf32>
    %22 = arith.addf %20, %21 : vector<128x128xf32>
    %cst_11 = arith.constant 0.000000e+00 : f32
    %23 = vector.broadcast %cst_11 : f32 to vector<128x128xf32>
    %24 = arith.cmpf oge, %22, %23 : vector<128x128xf32>
    %cst_12 = arith.constant 2.000000e-01 : f32
    %25 = vector.broadcast %cst_12 : f32 to vector<128x128xf32>
    %26 = arith.mulf %25, %22 : vector<128x128xf32>
    %27 = arith.select %24, %22, %26 : vector<128x128xi1>, vector<128x128xf32>
    %28 = arith.truncf %27 : vector<128x128xf32> to vector<128x128xbf16>
    %c0_13 = arith.constant 0 : index
    %c0_14 = arith.constant 0 : index
    %29 = vector.load %arg6[%c0_13, %c0_14] : memref<128x128xbf16, #tpu.memory_space<vmem>>, vector<128x128xbf16>
    tpu.vector_store %arg6[%c0_13, %c0_14], %28 {strides = array<i32>} : memref<128x128xbf16, #tpu.memory_space<vmem>>, vector<128x128xbf16>,
    return
  }
  func.func @transform_0(%arg0: i32, %arg1: i32) -> (i32, i32) {
    %c0_i32 = arith.constant 0 : i32
    return %arg0, %arg1 : i32, i32
  }
  func.func @transform_1(%arg0: i32, %arg1: i32) -> (i32, i32) {
    %c0_i32 = arith.constant 0 : i32
    %c0_i32_0 = arith.constant 0 : i32
    return %c0_i32, %arg1 : i32, i32
  }
  func.func @transform_2(%arg0: i32, %arg1: i32) -> (i32, i32) {
    %c0_i32 = arith.constant 0 : i32
    %c0_i32_0 = arith.constant 0 : i32
    return %c0_i32, %arg1 : i32, i32
  }
  func.func @transform_3(%arg0: i32, %arg1: i32) -> (i32, i32) {
    %c0_i32 = arith.constant 0 : i32
    %c0_i32_0 = arith.constant 0 : i32
    return %c0_i32, %arg1 : i32, i32
  }
  func.func @transform_4(%arg0: i32, %arg1: i32) -> (i32, i32) {
    %c0_i32 = arith.constant 0 : i32
    return %arg0, %arg1 : i32, i32
  }
}

module attributes {stable_mosaic.version = 11 : i64} {
  func.func @_matmul_stats_kernel(%arg0: i32, %arg1: i32, %arg2: i32, %arg3: memref<32x256xbf16, #tpu.memory_space<vmem>>, %arg4: memref<256x128xbf16, #tpu.memory_space<vmem>>, %arg5: memref<32x128xf32, #tpu.memory_space<vmem>>, %arg6: memref<2x128xf32, #tpu.memory_space<vmem>>, %arg7: memref<32x128xf32, #tpu.memory_space<vmem>>) attributes {dimension_semantics = [#tpu.dimension_semantics<parallel>, #tpu.dimension_semantics<arbitrary>, #tpu.dimension_semantics<arbitrary>], iteration_bounds = array<i64: 1, 1, 1>, scalar_prefetch = 0 : i64, scratch_operands = 1 : i64, tpu.core_type = #tpu.core_type<tc>, window_params = [{transform_indices = @transform_0, window_bounds = array<i64: 32, 256>}, {transform_indices = @transform_1, window_bounds = array<i64: 256, 128>}, {transform_indices = @transform_2, window_bounds = array<i64: 32, 128>}, {transform_indices = @transform_3, window_bounds = array<i64: 2, 128>}]} {
    %c0_i32 = arith.constant 0 : i32
    %0 = arith.cmpi eq, %arg2, %c0_i32 : i32
    %1 = arith.extui %0 : i1 to i32
    %c0_i32_0 = arith.constant 0 : i32
    %2 = arith.cmpi ne, %1, %c0_i32_0 : i32
    scf.if %2 {
      %cst_13 = arith.constant 0.000000e+00 : f32
      %17 = vector.broadcast %cst_13 : f32 to vector<32x128xf32>
      %c0_14 = arith.constant 0 : index
      %c0_15 = arith.constant 0 : index
      %18 = vector.load %arg7[%c0_14, %c0_15] : memref<32x128xf32, #tpu.memory_space<vmem>>, vector<32x128xf32>
      tpu.vector_store %arg7[%c0_14, %c0_15], %17 {strides = array<i32>} : memref<32x128xf32, #tpu.memory_space<vmem>>, vector<32x128xf32>,
    } else {
    }
    %c0_i32_1 = arith.constant 0 : i32
    %3 = arith.cmpi eq, %arg1, %c0_i32_1 : i32
    %c0_i32_2 = arith.constant 0 : i32
    %4 = arith.cmpi eq, %arg2, %c0_i32_2 : i32
    %5 = arith.andi %3, %4 : i1
    %6 = arith.extui %5 : i1 to i32
    %c0_i32_3 = arith.constant 0 : i32
    %7 = arith.cmpi ne, %6, %c0_i32_3 : i32
    scf.if %7 {
      %cst_13 = arith.constant 0.000000e+00 : f32
      %17 = vector.broadcast %cst_13 : f32 to vector<2x128xf32>
      %c0_14 = arith.constant 0 : index
      %c0_15 = arith.constant 0 : index
      %18 = vector.load %arg6[%c0_14, %c0_15] : memref<2x128xf32, #tpu.memory_space<vmem>>, vector<2x128xf32>
      tpu.vector_store %arg6[%c0_14, %c0_15], %17 {strides = array<i32>} : memref<2x128xf32, #tpu.memory_space<vmem>>, vector<2x128xf32>,
    } else {
    }
    %c0 = arith.constant 0 : index
    %c0_4 = arith.constant 0 : index
    %8 = vector.load %arg7[%c0, %c0_4] : memref<32x128xf32, #tpu.memory_space<vmem>>, vector<32x128xf32>
    %c0_5 = arith.constant 0 : index
    %c0_6 = arith.constant 0 : index
    %9 = vector.load %arg3[%c0_5, %c0_6] : memref<32x256xbf16, #tpu.memory_space<vmem>>, vector<32x256xbf16>
    %c0_7 = arith.constant 0 : index
    %c0_8 = arith.constant 0 : index
    %10 = vector.load %arg4[%c0_7, %c0_8] : memref<256x128xbf16, #tpu.memory_space<vmem>>, vector<256x128xbf16>
    %cst = arith.constant dense<0.000000e+00> : vector<32x128xf32>
    %11 = tpu.matmul %9, %10, %cst {dimension_numbers = #tpu.dot_dimension_numbers<[1], [0], [0], [1], [0, 0, 1, 1], [], []>} : vector<32x256xbf16>, vector<256x128xbf16>, vector<32x128xf32> -> vector<32x128xf32>
    %12 = arith.addf %8, %11 : vector<32x128xf32>
    %c0_9 = arith.constant 0 : index
    %c0_10 = arith.constant 0 : index
    %13 = vector.load %arg7[%c0_9, %c0_10] : memref<32x128xf32, #tpu.memory_space<vmem>>, vector<32x128xf32>
    tpu.vector_store %arg7[%c0_9, %c0_10], %12 {strides = array<i32>} : memref<32x128xf32, #tpu.memory_space<vmem>>, vector<32x128xf32>,
    %c0_i32_11 = arith.constant 0 : i32
    %14 = arith.cmpi eq, %arg2, %c0_i32_11 : i32
    %15 = arith.extui %14 : i1 to i32
    %c0_i32_12 = arith.constant 0 : i32
    %16 = arith.cmpi ne, %15, %c0_i32_12 : i32
    scf.if %16 {
      %c0_13 = arith.constant 0 : index
      %c0_14 = arith.constant 0 : index
      %17 = vector.load %arg7[%c0_13, %c0_14] : memref<32x128xf32, #tpu.memory_space<vmem>>, vector<32x128xf32>
      %c0_15 = arith.constant 0 : index
      %c0_16 = arith.constant 0 : index
      %18 = vector.load %arg5[%c0_15, %c0_16] : memref<32x128xf32, #tpu.memory_space<vmem>>, vector<32x128xf32>
      tpu.vector_store %arg5[%c0_15, %c0_16], %17 {strides = array<i32>} : memref<32x128xf32, #tpu.memory_space<vmem>>, vector<32x128xf32>,
      %c0_17 = arith.constant 0 : index
      %c0_18 = arith.constant 0 : index
      %19 = vector.load %arg6[%c0_17, %c0_18] : memref<2x128xf32, #tpu.memory_space<vmem>>, vector<1x128xf32>
      %cst_19 = arith.constant dense<0.000000e+00> : vector<128xf32>
      %20 = vector.multi_reduction <add>, %17, %cst_19 [0] : vector<32x128xf32> to vector<128xf32>
      %21 = vector.shape_cast %20 : vector<128xf32> to vector<1x128xf32>
      %22 = arith.addf %19, %21 : vector<1x128xf32>
      %c0_20 = arith.constant 0 : index
      %c0_21 = arith.constant 0 : index
      %23 = vector.load %arg6[%c0_20, %c0_21] : memref<2x128xf32, #tpu.memory_space<vmem>>, vector<1x128xf32>
      tpu.vector_store %arg6[%c0_20, %c0_21], %22 {strides = array<i32>} : memref<2x128xf32, #tpu.memory_space<vmem>>, vector<1x128xf32>,
      %c1 = arith.constant 1 : index
      %c0_22 = arith.constant 0 : index
      %24 = vector.load %arg6[%c1, %c0_22] : memref<2x128xf32, #tpu.memory_space<vmem>>, vector<1x128xf32>
      %25 = arith.mulf %17, %17 : vector<32x128xf32>
      %cst_23 = arith.constant dense<0.000000e+00> : vector<128xf32>
      %26 = vector.multi_reduction <add>, %25, %cst_23 [0] : vector<32x128xf32> to vector<128xf32>
      %27 = vector.shape_cast %26 : vector<128xf32> to vector<1x128xf32>
      %28 = arith.addf %24, %27 : vector<1x128xf32>
      %c1_24 = arith.constant 1 : index
      %c0_25 = arith.constant 0 : index
      %29 = vector.load %arg6[%c1_24, %c0_25] : memref<2x128xf32, #tpu.memory_space<vmem>>, vector<1x128xf32>
      tpu.vector_store %arg6[%c1_24, %c0_25], %28 {strides = array<i32>} : memref<2x128xf32, #tpu.memory_space<vmem>>, vector<1x128xf32>,
    } else {
    }
    return
  }
  func.func @transform_0(%arg0: i32, %arg1: i32, %arg2: i32) -> (i32, i32) {
    %c0_i32 = arith.constant 0 : i32
    return %arg1, %arg2 : i32, i32
  }
  func.func @transform_1(%arg0: i32, %arg1: i32, %arg2: i32) -> (i32, i32) {
    %c0_i32 = arith.constant 0 : i32
    return %arg2, %arg0 : i32, i32
  }
  func.func @transform_2(%arg0: i32, %arg1: i32, %arg2: i32) -> (i32, i32) {
    %c0_i32 = arith.constant 0 : i32
    return %arg1, %arg0 : i32, i32
  }
  func.func @transform_3(%arg0: i32, %arg1: i32, %arg2: i32) -> (i32, i32) {
    %c0_i32 = arith.constant 0 : i32
    %c0_i32_0 = arith.constant 0 : i32
    return %c0_i32, %arg0 : i32, i32
  }
}

module attributes {stable_mosaic.version = 11 : i64} {
  func.func @kernel(%arg0: i32, %arg1: i32, %arg2: memref<32x128xf32, #tpu.memory_space<vmem>>, %arg3: memref<2x128xf32, #tpu.memory_space<vmem>>, %arg4: memref<1x128xf32, #tpu.memory_space<vmem>>, %arg5: memref<1x128xf32, #tpu.memory_space<vmem>>, %arg6: memref<32x128xbf16, #tpu.memory_space<vmem>>) attributes {dimension_semantics = [#tpu.dimension_semantics<parallel>, #tpu.dimension_semantics<parallel>], iteration_bounds = array<i64: 1, 1>, scalar_prefetch = 0 : i64, scratch_operands = 0 : i64, tpu.core_type = #tpu.core_type<tc>, window_params = [{transform_indices = @transform_0, window_bounds = array<i64: 32, 128>}, {transform_indices = @transform_1, window_bounds = array<i64: 2, 128>}, {transform_indices = @transform_2, window_bounds = array<i64: 1, 128>}, {transform_indices = @transform_3, window_bounds = array<i64: 1, 128>}, {transform_indices = @transform_4, window_bounds = array<i64: 32, 128>}]} {
    %c0 = arith.constant 0 : index
    %c0_0 = arith.constant 0 : index
    %0 = vector.load %arg3[%c0, %c0_0] : memref<2x128xf32, #tpu.memory_space<vmem>>, vector<1x128xf32>
    %cst = arith.constant 3.125000e-02 : f32
    %1 = vector.broadcast %cst : f32 to vector<1x128xf32>
    %2 = arith.mulf %0, %1 : vector<1x128xf32>
    %c1 = arith.constant 1 : index
    %c0_1 = arith.constant 0 : index
    %3 = vector.load %arg3[%c1, %c0_1] : memref<2x128xf32, #tpu.memory_space<vmem>>, vector<1x128xf32>
    %cst_2 = arith.constant 3.125000e-02 : f32
    %4 = vector.broadcast %cst_2 : f32 to vector<1x128xf32>
    %5 = arith.mulf %3, %4 : vector<1x128xf32>
    %6 = arith.mulf %2, %2 : vector<1x128xf32>
    %7 = arith.subf %5, %6 : vector<1x128xf32>
    %cst_3 = arith.constant 0.000000e+00 : f32
    %8 = vector.broadcast %cst_3 : f32 to vector<1x128xf32>
    %9 = arith.maximumf %7, %8 : vector<1x128xf32>
    %cst_4 = arith.constant 9.99999974E-6 : f32
    %10 = vector.broadcast %cst_4 : f32 to vector<1x128xf32>
    %11 = arith.addf %9, %10 : vector<1x128xf32>
    %12 = math.rsqrt %11 : vector<1x128xf32>
    %c0_5 = arith.constant 0 : index
    %c0_6 = arith.constant 0 : index
    %13 = vector.load %arg4[%c0_5, %c0_6] : memref<1x128xf32, #tpu.memory_space<vmem>>, vector<1x128xf32>
    %14 = arith.mulf %12, %13 : vector<1x128xf32>
    %c0_7 = arith.constant 0 : index
    %c0_8 = arith.constant 0 : index
    %15 = vector.load %arg5[%c0_7, %c0_8] : memref<1x128xf32, #tpu.memory_space<vmem>>, vector<1x128xf32>
    %16 = arith.mulf %2, %14 : vector<1x128xf32>
    %17 = arith.subf %15, %16 : vector<1x128xf32>
    %c0_9 = arith.constant 0 : index
    %c0_10 = arith.constant 0 : index
    %18 = vector.load %arg2[%c0_9, %c0_10] : memref<32x128xf32, #tpu.memory_space<vmem>>, vector<32x128xf32>
    %19 = vector.broadcast %14 : vector<1x128xf32> to vector<32x128xf32>
    %20 = arith.mulf %18, %19 : vector<32x128xf32>
    %21 = vector.broadcast %17 : vector<1x128xf32> to vector<32x128xf32>
    %22 = arith.addf %20, %21 : vector<32x128xf32>
    %cst_11 = arith.constant 0.000000e+00 : f32
    %23 = vector.broadcast %cst_11 : f32 to vector<32x128xf32>
    %24 = arith.cmpf oge, %22, %23 : vector<32x128xf32>
    %cst_12 = arith.constant 2.000000e-01 : f32
    %25 = vector.broadcast %cst_12 : f32 to vector<32x128xf32>
    %26 = arith.mulf %25, %22 : vector<32x128xf32>
    %27 = arith.select %24, %22, %26 : vector<32x128xi1>, vector<32x128xf32>
    %28 = arith.truncf %27 : vector<32x128xf32> to vector<32x128xbf16>
    %c0_13 = arith.constant 0 : index
    %c0_14 = arith.constant 0 : index
    %29 = vector.load %arg6[%c0_13, %c0_14] : memref<32x128xbf16, #tpu.memory_space<vmem>>, vector<32x128xbf16>
    tpu.vector_store %arg6[%c0_13, %c0_14], %28 {strides = array<i32>} : memref<32x128xbf16, #tpu.memory_space<vmem>>, vector<32x128xbf16>,
    return
  }
  func.func @transform_0(%arg0: i32, %arg1: i32) -> (i32, i32) {
    %c0_i32 = arith.constant 0 : i32
    return %arg0, %arg1 : i32, i32
  }
  func.func @transform_1(%arg0: i32, %arg1: i32) -> (i32, i32) {
    %c0_i32 = arith.constant 0 : i32
    %c0_i32_0 = arith.constant 0 : i32
    return %c0_i32, %arg1 : i32, i32
  }
  func.func @transform_2(%arg0: i32, %arg1: i32) -> (i32, i32) {
    %c0_i32 = arith.constant 0 : i32
    %c0_i32_0 = arith.constant 0 : i32
    return %c0_i32, %arg1 : i32, i32
  }
  func.func @transform_3(%arg0: i32, %arg1: i32) -> (i32, i32) {
    %c0_i32 = arith.constant 0 : i32
    %c0_i32_0 = arith.constant 0 : i32
    return %c0_i32, %arg1 : i32, i32
  }
  func.func @transform_4(%arg0: i32, %arg1: i32) -> (i32, i32) {
    %c0_i32 = arith.constant 0 : i32
    return %arg0, %arg1 : i32, i32
  }
}

module attributes {stable_mosaic.version = 11 : i64} {
  func.func @_matmul_stats_kernel(%arg0: i32, %arg1: i32, %arg2: i32, %arg3: memref<8x512xbf16, #tpu.memory_space<vmem>>, %arg4: memref<512x128xbf16, #tpu.memory_space<vmem>>, %arg5: memref<8x128xf32, #tpu.memory_space<vmem>>, %arg6: memref<2x128xf32, #tpu.memory_space<vmem>>, %arg7: memref<8x128xf32, #tpu.memory_space<vmem>>) attributes {dimension_semantics = [#tpu.dimension_semantics<parallel>, #tpu.dimension_semantics<arbitrary>, #tpu.dimension_semantics<arbitrary>], iteration_bounds = array<i64: 1, 1, 1>, scalar_prefetch = 0 : i64, scratch_operands = 1 : i64, tpu.core_type = #tpu.core_type<tc>, window_params = [{transform_indices = @transform_0, window_bounds = array<i64: 8, 512>}, {transform_indices = @transform_1, window_bounds = array<i64: 512, 128>}, {transform_indices = @transform_2, window_bounds = array<i64: 8, 128>}, {transform_indices = @transform_3, window_bounds = array<i64: 2, 128>}]} {
    %c0_i32 = arith.constant 0 : i32
    %0 = arith.cmpi eq, %arg2, %c0_i32 : i32
    %1 = arith.extui %0 : i1 to i32
    %c0_i32_0 = arith.constant 0 : i32
    %2 = arith.cmpi ne, %1, %c0_i32_0 : i32
    scf.if %2 {
      %cst_13 = arith.constant 0.000000e+00 : f32
      %17 = vector.broadcast %cst_13 : f32 to vector<8x128xf32>
      %c0_14 = arith.constant 0 : index
      %c0_15 = arith.constant 0 : index
      %18 = vector.load %arg7[%c0_14, %c0_15] : memref<8x128xf32, #tpu.memory_space<vmem>>, vector<8x128xf32>
      tpu.vector_store %arg7[%c0_14, %c0_15], %17 {strides = array<i32>} : memref<8x128xf32, #tpu.memory_space<vmem>>, vector<8x128xf32>,
    } else {
    }
    %c0_i32_1 = arith.constant 0 : i32
    %3 = arith.cmpi eq, %arg1, %c0_i32_1 : i32
    %c0_i32_2 = arith.constant 0 : i32
    %4 = arith.cmpi eq, %arg2, %c0_i32_2 : i32
    %5 = arith.andi %3, %4 : i1
    %6 = arith.extui %5 : i1 to i32
    %c0_i32_3 = arith.constant 0 : i32
    %7 = arith.cmpi ne, %6, %c0_i32_3 : i32
    scf.if %7 {
      %cst_13 = arith.constant 0.000000e+00 : f32
      %17 = vector.broadcast %cst_13 : f32 to vector<2x128xf32>
      %c0_14 = arith.constant 0 : index
      %c0_15 = arith.constant 0 : index
      %18 = vector.load %arg6[%c0_14, %c0_15] : memref<2x128xf32, #tpu.memory_space<vmem>>, vector<2x128xf32>
      tpu.vector_store %arg6[%c0_14, %c0_15], %17 {strides = array<i32>} : memref<2x128xf32, #tpu.memory_space<vmem>>, vector<2x128xf32>,
    } else {
    }
    %c0 = arith.constant 0 : index
    %c0_4 = arith.constant 0 : index
    %8 = vector.load %arg7[%c0, %c0_4] : memref<8x128xf32, #tpu.memory_space<vmem>>, vector<8x128xf32>
    %c0_5 = arith.constant 0 : index
    %c0_6 = arith.constant 0 : index
    %9 = vector.load %arg3[%c0_5, %c0_6] : memref<8x512xbf16, #tpu.memory_space<vmem>>, vector<8x512xbf16>
    %c0_7 = arith.constant 0 : index
    %c0_8 = arith.constant 0 : index
    %10 = vector.load %arg4[%c0_7, %c0_8] : memref<512x128xbf16, #tpu.memory_space<vmem>>, vector<512x128xbf16>
    %cst = arith.constant dense<0.000000e+00> : vector<8x128xf32>
    %11 = tpu.matmul %9, %10, %cst {dimension_numbers = #tpu.dot_dimension_numbers<[1], [0], [0], [1], [0, 0, 1, 1], [], []>} : vector<8x512xbf16>, vector<512x128xbf16>, vector<8x128xf32> -> vector<8x128xf32>
    %12 = arith.addf %8, %11 : vector<8x128xf32>
    %c0_9 = arith.constant 0 : index
    %c0_10 = arith.constant 0 : index
    %13 = vector.load %arg7[%c0_9, %c0_10] : memref<8x128xf32, #tpu.memory_space<vmem>>, vector<8x128xf32>
    tpu.vector_store %arg7[%c0_9, %c0_10], %12 {strides = array<i32>} : memref<8x128xf32, #tpu.memory_space<vmem>>, vector<8x128xf32>,
    %c0_i32_11 = arith.constant 0 : i32
    %14 = arith.cmpi eq, %arg2, %c0_i32_11 : i32
    %15 = arith.extui %14 : i1 to i32
    %c0_i32_12 = arith.constant 0 : i32
    %16 = arith.cmpi ne, %15, %c0_i32_12 : i32
    scf.if %16 {
      %c0_13 = arith.constant 0 : index
      %c0_14 = arith.constant 0 : index
      %17 = vector.load %arg7[%c0_13, %c0_14] : memref<8x128xf32, #tpu.memory_space<vmem>>, vector<8x128xf32>
      %c0_15 = arith.constant 0 : index
      %c0_16 = arith.constant 0 : index
      %18 = vector.load %arg5[%c0_15, %c0_16] : memref<8x128xf32, #tpu.memory_space<vmem>>, vector<8x128xf32>
      tpu.vector_store %arg5[%c0_15, %c0_16], %17 {strides = array<i32>} : memref<8x128xf32, #tpu.memory_space<vmem>>, vector<8x128xf32>,
      %c0_17 = arith.constant 0 : index
      %c0_18 = arith.constant 0 : index
      %19 = vector.load %arg6[%c0_17, %c0_18] : memref<2x128xf32, #tpu.memory_space<vmem>>, vector<1x128xf32>
      %cst_19 = arith.constant dense<0.000000e+00> : vector<128xf32>
      %20 = vector.multi_reduction <add>, %17, %cst_19 [0] : vector<8x128xf32> to vector<128xf32>
      %21 = vector.shape_cast %20 : vector<128xf32> to vector<1x128xf32>
      %22 = arith.addf %19, %21 : vector<1x128xf32>
      %c0_20 = arith.constant 0 : index
      %c0_21 = arith.constant 0 : index
      %23 = vector.load %arg6[%c0_20, %c0_21] : memref<2x128xf32, #tpu.memory_space<vmem>>, vector<1x128xf32>
      tpu.vector_store %arg6[%c0_20, %c0_21], %22 {strides = array<i32>} : memref<2x128xf32, #tpu.memory_space<vmem>>, vector<1x128xf32>,
      %c1 = arith.constant 1 : index
      %c0_22 = arith.constant 0 : index
      %24 = vector.load %arg6[%c1, %c0_22] : memref<2x128xf32, #tpu.memory_space<vmem>>, vector<1x128xf32>
      %25 = arith.mulf %17, %17 : vector<8x128xf32>
      %cst_23 = arith.constant dense<0.000000e+00> : vector<128xf32>
      %26 = vector.multi_reduction <add>, %25, %cst_23 [0] : vector<8x128xf32> to vector<128xf32>
      %27 = vector.shape_cast %26 : vector<128xf32> to vector<1x128xf32>
      %28 = arith.addf %24, %27 : vector<1x128xf32>
      %c1_24 = arith.constant 1 : index
      %c0_25 = arith.constant 0 : index
      %29 = vector.load %arg6[%c1_24, %c0_25] : memref<2x128xf32, #tpu.memory_space<vmem>>, vector<1x128xf32>
      tpu.vector_store %arg6[%c1_24, %c0_25], %28 {strides = array<i32>} : memref<2x128xf32, #tpu.memory_space<vmem>>, vector<1x128xf32>,
    } else {
    }
    return
  }
  func.func @transform_0(%arg0: i32, %arg1: i32, %arg2: i32) -> (i32, i32) {
    %c0_i32 = arith.constant 0 : i32
    return %arg1, %arg2 : i32, i32
  }
  func.func @transform_1(%arg0: i32, %arg1: i32, %arg2: i32) -> (i32, i32) {
    %c0_i32 = arith.constant 0 : i32
    return %arg2, %arg0 : i32, i32
  }
  func.func @transform_2(%arg0: i32, %arg1: i32, %arg2: i32) -> (i32, i32) {
    %c0_i32 = arith.constant 0 : i32
    return %arg1, %arg0 : i32, i32
  }
  func.func @transform_3(%arg0: i32, %arg1: i32, %arg2: i32) -> (i32, i32) {
    %c0_i32 = arith.constant 0 : i32
    %c0_i32_0 = arith.constant 0 : i32
    return %c0_i32, %arg0 : i32, i32
  }
}

module attributes {stable_mosaic.version = 11 : i64} {
  func.func @kernel(%arg0: i32, %arg1: i32, %arg2: memref<8x128xf32, #tpu.memory_space<vmem>>, %arg3: memref<2x128xf32, #tpu.memory_space<vmem>>, %arg4: memref<1x128xf32, #tpu.memory_space<vmem>>, %arg5: memref<1x128xf32, #tpu.memory_space<vmem>>, %arg6: memref<8x128xf32, #tpu.memory_space<vmem>>) attributes {dimension_semantics = [#tpu.dimension_semantics<parallel>, #tpu.dimension_semantics<parallel>], iteration_bounds = array<i64: 1, 1>, scalar_prefetch = 0 : i64, scratch_operands = 0 : i64, tpu.core_type = #tpu.core_type<tc>, window_params = [{transform_indices = @transform_0, window_bounds = array<i64: 8, 128>}, {transform_indices = @transform_1, window_bounds = array<i64: 2, 128>}, {transform_indices = @transform_2, window_bounds = array<i64: 1, 128>}, {transform_indices = @transform_3, window_bounds = array<i64: 1, 128>}, {transform_indices = @transform_4, window_bounds = array<i64: 8, 128>}]} {
    %c0 = arith.constant 0 : index
    %c0_0 = arith.constant 0 : index
    %0 = vector.load %arg3[%c0, %c0_0] : memref<2x128xf32, #tpu.memory_space<vmem>>, vector<1x128xf32>
    %cst = arith.constant 1.250000e-01 : f32
    %1 = vector.broadcast %cst : f32 to vector<1x128xf32>
    %2 = arith.mulf %0, %1 : vector<1x128xf32>
    %c1 = arith.constant 1 : index
    %c0_1 = arith.constant 0 : index
    %3 = vector.load %arg3[%c1, %c0_1] : memref<2x128xf32, #tpu.memory_space<vmem>>, vector<1x128xf32>
    %cst_2 = arith.constant 1.250000e-01 : f32
    %4 = vector.broadcast %cst_2 : f32 to vector<1x128xf32>
    %5 = arith.mulf %3, %4 : vector<1x128xf32>
    %6 = arith.mulf %2, %2 : vector<1x128xf32>
    %7 = arith.subf %5, %6 : vector<1x128xf32>
    %cst_3 = arith.constant 0.000000e+00 : f32
    %8 = vector.broadcast %cst_3 : f32 to vector<1x128xf32>
    %9 = arith.maximumf %7, %8 : vector<1x128xf32>
    %cst_4 = arith.constant 9.99999974E-6 : f32
    %10 = vector.broadcast %cst_4 : f32 to vector<1x128xf32>
    %11 = arith.addf %9, %10 : vector<1x128xf32>
    %12 = math.rsqrt %11 : vector<1x128xf32>
    %c0_5 = arith.constant 0 : index
    %c0_6 = arith.constant 0 : index
    %13 = vector.load %arg4[%c0_5, %c0_6] : memref<1x128xf32, #tpu.memory_space<vmem>>, vector<1x128xf32>
    %14 = arith.mulf %12, %13 : vector<1x128xf32>
    %c0_7 = arith.constant 0 : index
    %c0_8 = arith.constant 0 : index
    %15 = vector.load %arg5[%c0_7, %c0_8] : memref<1x128xf32, #tpu.memory_space<vmem>>, vector<1x128xf32>
    %16 = arith.mulf %2, %14 : vector<1x128xf32>
    %17 = arith.subf %15, %16 : vector<1x128xf32>
    %c0_9 = arith.constant 0 : index
    %c0_10 = arith.constant 0 : index
    %18 = vector.load %arg2[%c0_9, %c0_10] : memref<8x128xf32, #tpu.memory_space<vmem>>, vector<8x128xf32>
    %19 = vector.broadcast %14 : vector<1x128xf32> to vector<8x128xf32>
    %20 = arith.mulf %18, %19 : vector<8x128xf32>
    %21 = vector.broadcast %17 : vector<1x128xf32> to vector<8x128xf32>
    %22 = arith.addf %20, %21 : vector<8x128xf32>
    %cst_11 = arith.constant 0.000000e+00 : f32
    %23 = vector.broadcast %cst_11 : f32 to vector<8x128xf32>
    %24 = arith.cmpf oge, %22, %23 : vector<8x128xf32>
    %cst_12 = arith.constant 2.000000e-01 : f32
    %25 = vector.broadcast %cst_12 : f32 to vector<8x128xf32>
    %26 = arith.mulf %25, %22 : vector<8x128xf32>
    %27 = arith.select %24, %22, %26 : vector<8x128xi1>, vector<8x128xf32>
    %c0_13 = arith.constant 0 : index
    %c0_14 = arith.constant 0 : index
    %28 = vector.load %arg6[%c0_13, %c0_14] : memref<8x128xf32, #tpu.memory_space<vmem>>, vector<8x128xf32>
    tpu.vector_store %arg6[%c0_13, %c0_14], %27 {strides = array<i32>} : memref<8x128xf32, #tpu.memory_space<vmem>>, vector<8x128xf32>,
    return
  }
  func.func @transform_0(%arg0: i32, %arg1: i32) -> (i32, i32) {
    %c0_i32 = arith.constant 0 : i32
    return %arg0, %arg1 : i32, i32
  }
  func.func @transform_1(%arg0: i32, %arg1: i32) -> (i32, i32) {
    %c0_i32 = arith.constant 0 : i32
    %c0_i32_0 = arith.constant 0 : i32
    return %c0_i32, %arg1 : i32, i32
  }
  func.func @transform_2(%arg0: i32, %arg1: i32) -> (i32, i32) {
    %c0_i32 = arith.constant 0 : i32
    %c0_i32_0 = arith.constant 0 : i32
    return %c0_i32, %arg1 : i32, i32
  }
  func.func @transform_3(%arg0: i32, %arg1: i32) -> (i32, i32) {
    %c0_i32 = arith.constant 0 : i32
    %c0_i32_0 = arith.constant 0 : i32
    return %c0_i32, %arg1 : i32, i32
  }
  func.func @transform_4(%arg0: i32, %arg1: i32) -> (i32, i32) {
    %c0_i32 = arith.constant 0 : i32
    return %arg0, %arg1 : i32, i32
  }
}

</mosaic_0001>

<bundles_post_ra>
// kernel: feature_extractor_forward.7
= control target key start
LH: loop header
LB: loop body
LE: loop exit
PB: predicated region body
PF: predicated region fallthrough
CT: control target
= control target key end

     0   :  { %s2388_s1 = inlined_call_operand.vmem [shape: bf16[128,128], index: 1, kind: input, shape index: {}]   ;;  %s2389_s0 = inlined_call_operand.vmem [shape: bf16[512,128], index: 0, kind: input, shape index: {}]   ;;  %s2390_s2 = inlined_call_operand.vmem [shape: f32[1,128], index: 2, kind: input, shape index: {}]   ;;  %s2391_s3 = inlined_call_operand.vmem [shape: bf16[512,128], index: 3, kind: output, shape index: {}]  }
   0x1   :  { %v2034_v0 = vld [vmem:[%s2388_s1] sm:$0xff]   ;;  %v2035_v1 = vld [vmem:[%s2388_s1 + $0x8] sm:$0xff]   ;;  %v2036_v2 = vld [vmem:[%s2388_s1 + $0x10] sm:$0xff]  }
   0x2   :  { %1938 = vmatprep.subr.bf16.mxu0 %v2034_v0  ;;  %2018 = vmatprep.subr.bf16.mxu1 %v2034_v0  ;;  %v2037_v3 = vld [vmem:[%s2388_s1 + $0x18] sm:$0xff]   ;;  %v2042_v4 = vld [vmem:[%s2389_s0] sm:$0xff]   ;;  %v2039_v7 = vld [vmem:[%s2388_s1 + $0x28] sm:$0xff]  }
   0x3   :  { %1939 = vmatpush3.bf16.msra.mxu0 %v2034_v0  ;;  %2026 = vmatpush3.bf16.msra.mxu1 %v2034_v0  ;;  %v2043_v5 = vld [vmem:[%s2389_s0 + $0x80] sm:$0xff]   ;;  %v2040_v8 = vld [vmem:[%s2388_s1 + $0x30] sm:$0xff]   ;;  %v2041_v9 = vld [vmem:[%s2388_s1 + $0x38] sm:$0xff]  }
   0x4   :  { %1940 = vmatprep.subr.bf16.mxu0 %v2035_v1  ;;  %2019 = vmatprep.subr.bf16.mxu1 %v2035_v1  ;;  %v2038_v6 = vld [vmem:[%s2388_s1 + $0x20] sm:$0xff]   ;;  %v2044_v10 = vld [vmem:[%s2389_s0 + $0x8] sm:$0xff]   ;;  %v2046_v12 = vld [vmem:[%s2389_s0 + $0x10] sm:$0xff]  }
   0x5   :  { %1954 = vmatprep.mubr.bf16.mxu0 %v2042_v4  ;;  %1986 = vmatprep.mubr.bf16.mxu1 %v2043_v5  ;;  %v2045_v11 = vld [vmem:[%s2389_s0 + $0x88] sm:$0xff]   ;;  %v2047_v13 = vld [vmem:[%s2389_s0 + $0x90] sm:$0xff]   ;;  %v2048_v14 = vld [vmem:[%s2389_s0 + $0x18] sm:$0xff]  }
   0x6   :  { %v2049_v15 = vld [vmem:[%s2389_s0 + $0x98] sm:$0xff]   ;;  %v2050_v16 = vld [vmem:[%s2389_s0 + $0x20] sm:$0xff]   ;;  %v2052_v18 = vld [vmem:[%s2389_s0 + $0x28] sm:$0xff]  }
   0x7   :  { %1941 = vmatpush3.bf16.msra.mxu0 %v2035_v1  ;;  %2027 = vmatpush3.bf16.msra.mxu1 %v2035_v1  ;;  %v2051_v17 = vld [vmem:[%s2389_s0 + $0xa0] sm:$0xff]   ;;  %v2053_v19 = vld [vmem:[%s2389_s0 + $0xa8] sm:$0xff]   ;;  %v2054_v20 = vld [vmem:[%s2389_s0 + $0x30] sm:$0xff]  }
   0x8   :  { %1942 = vmatprep.subr.bf16.mxu0 %v2036_v2  ;;  %2020 = vmatprep.subr.bf16.mxu1 %v2036_v2  ;;  %v2055_v21 = vld [vmem:[%s2389_s0 + $0xb0] sm:$0xff]   ;;  %v2056_v22 = vld [vmem:[%s2389_s0 + $0x38] sm:$0xff]   ;;  %v2058_v24 = vld [vmem:[%s2389_s0 + $0x40] sm:$0xff]  }
   0x9   :  { %v2057_v23 = vld [vmem:[%s2389_s0 + $0xb8] sm:$0xff]   ;;  %v2059_v25 = vld [vmem:[%s2389_s0 + $0xc0] sm:$0xff]   ;;  %v2060_v26 = vld [vmem:[%s2389_s0 + $0x48] sm:$0xff]  }
   0xa   :  { %v2061_v27 = vld [vmem:[%s2389_s0 + $0xc8] sm:$0xff]   ;;  %v2062_v28 = vld [vmem:[%s2389_s0 + $0x50] sm:$0xff]   ;;  %v2064_v30 = vld [vmem:[%s2389_s0 + $0x58] sm:$0xff]  }
   0xb   :  { %1943 = vmatpush3.bf16.msra.mxu0 %v2036_v2  ;;  %2028 = vmatpush3.bf16.msra.mxu1 %v2036_v2  ;;  %v2063_v29 = vld [vmem:[%s2389_s0 + $0xd0] sm:$0xff]   ;;  %v2065_v31 = vld [vmem:[%s2389_s0 + $0xd8] sm:$0xff]   ;;  %v2066_v32 = vld [vmem:[%s2389_s0 + $0x60] sm:$0xff]  }
   0xc   :  { %1944 = vmatprep.subr.bf16.mxu0 %v2037_v3  ;;  %2021 = vmatprep.subr.bf16.mxu1 %v2037_v3  ;;  %v2067_v33 = vld [vmem:[%s2389_s0 + $0xe0] sm:$0xff]   ;;  %v2068_v34 = vld [vmem:[%s2389_s0 + $0x68] sm:$0xff]   ;;  %v2070_v36 = vld [vmem:[%s2389_s0 + $0x70] sm:$0xff]  }
   0xd   :  { %v2069_v35 = vld [vmem:[%s2389_s0 + $0xe8] sm:$0xff]   ;;  %v2071_v37 = vld [vmem:[%s2389_s0 + $0xf0] sm:$0xff]   ;;  %v2072_v38 = vld [vmem:[%s2389_s0 + $0x78] sm:$0xff]  }
   0xe   :  { %v2073_v39 = vld [vmem:[%s2389_s0 + $0xf8] sm:$0xff]   ;;  %v2217_v40 = vld [vmem:[%s2390_s2] ss:$0 sm:$0xff] }
   0xf   :  { %1945 = vmatpush3.bf16.msra.mxu0 %v2037_v3  ;;  %2029 = vmatpush3.bf16.msra.mxu1 %v2037_v3 }
  0x10   :  { %1946 = vmatprep.subr.bf16.mxu0 %v2038_v6  ;;  %2022 = vmatprep.subr.bf16.mxu1 %v2038_v6 }
  0x13   :  { %1947 = vmatpush3.bf16.msra.mxu0 %v2038_v6  ;;  %2030 = vmatpush3.bf16.msra.mxu1 %v2038_v6 }
  0x14   :  { %1948 = vmatprep.subr.bf16.mxu0 %v2039_v7  ;;  %2023 = vmatprep.subr.bf16.mxu1 %v2039_v7 }
  0x17   :  { %1949 = vmatpush3.bf16.msra.mxu0 %v2039_v7  ;;  %2031 = vmatpush3.bf16.msra.mxu1 %v2039_v7 }
  0x18   :  { %1950 = vmatprep.subr.bf16.mxu0 %v2040_v8  ;;  %2024 = vmatprep.subr.bf16.mxu1 %v2040_v8 }
  0x1b   :  { %1951 = vmatpush3.bf16.msra.mxu0 %v2040_v8  ;;  %2032 = vmatpush3.bf16.msra.mxu1 %v2040_v8 }
  0x1c   :  { %1952 = vmatprep.subr.bf16.mxu0 %v2041_v9  ;;  %2025 = vmatprep.subr.bf16.mxu1 %v2041_v9 }
  0x1f   :  { %1953 = vmatpush3.bf16.msra.mxu0 %v2041_v9  ;;  %2033 = vmatpush3.bf16.msra.mxu1 %v2041_v9 }
  0x22   :  { %1955 = vmatmul.mubr.bf16.vlgmr.msra.gmra.mrb[0].mxu0 %v2044_v10  ;;  %1987 = vmatmul.mubr.bf16.vlgmr.msra.gmra.mrb[0].mxu1 %v2045_v11 }
  0x23   :  { %1958 = vmatprep.mubr.bf16.mxu0 %v2046_v12  ;;  %1990 = vmatprep.mubr.bf16.mxu1 %v2047_v13 }
  0x2a   :  { %1959 = vmatmul.mubr.bf16.gmra.mrb[4].mxu0 %v2048_v14  ;;  %1991 = vmatmul.mubr.bf16.gmra.mrb[4].mxu1 %v2049_v15 }
  0x2b   :  { %1962 = vmatprep.mubr.bf16.mxu0 %v2050_v16  ;;  %1994 = vmatprep.mubr.bf16.mxu1 %v2051_v17 }
  0x32   :  { %1963 = vmatmul.mubr.bf16.gmra.mrb[8].mxu0 %v2052_v18  ;;  %1995 = vmatmul.mubr.bf16.gmra.mrb[8].mxu1 %v2053_v19 }
  0x33   :  { %1966 = vmatprep.mubr.bf16.mxu0 %v2054_v20  ;;  %1998 = vmatprep.mubr.bf16.mxu1 %v2055_v21 }
  0x3a   :  { %1967 = vmatmul.mubr.bf16.gmra.mrb[12].mxu0 %v2056_v22  ;;  %1999 = vmatmul.mubr.bf16.gmra.mrb[12].mxu1 %v2057_v23 }
  0x3b   :  { %1970 = vmatprep.mubr.bf16.mxu0 %v2058_v24  ;;  %2002 = vmatprep.mubr.bf16.mxu1 %v2059_v25 }
  0x42   :  { %1971 = vmatmul.mubr.bf16.gmra.mrb[16].mxu0 %v2060_v26  ;;  %2003 = vmatmul.mubr.bf16.gmra.mrb[16].mxu1 %v2061_v27 }
  0x43   :  { %1974 = vmatprep.mubr.bf16.mxu0 %v2062_v28  ;;  %2006 = vmatprep.mubr.bf16.mxu1 %v2063_v29 }
  0x4a   :  { %1975 = vmatmul.mubr.bf16.gmra.mrb[20].mxu0 %v2064_v30  ;;  %2007 = vmatmul.mubr.bf16.gmra.mrb[20].mxu1 %v2065_v31 }
  0x4b   :  { %1978 = vmatprep.mubr.bf16.mxu0 %v2066_v32  ;;  %2010 = vmatprep.mubr.bf16.mxu1 %v2067_v33 }
  0x52   :  { %1979 = vmatmul.mubr.bf16.gmra.mrb[24].mxu0 %v2068_v34  ;;  %2011 = vmatmul.mubr.bf16.gmra.mrb[24].mxu1 %v2069_v35 }
  0x53   :  { %1982 = vmatprep.mubr.bf16.mxu0 %v2070_v36  ;;  %2014 = vmatprep.mubr.bf16.mxu1 %v2071_v37 }
  0x5a   :  { %1983 = vmatmul.mubr.bf16.gmra.mrb[28].mxu0 %v2072_v38  ;;  %2015 = vmatmul.mubr.bf16.gmra.mrb[28].mxu1 %v2073_v39 }
  0xf5   :  { %v1956_v41 = vpop.f32.mrb[0].mxu0  ;;  %v1988_v42 = vpop.f32.mrb[0].mxu1 }
  0xf6   :  { %v960_v43 = vadd.f32 %v1956_v41, %v2217_v40  ;;  %v992_v44 = vadd.f32 %v1988_v42, %v2217_v40  ;;  %v501_v45 = vpop.f32.mrb[1].mxu0  ;;  %v629_v46 = vpop.f32.mrb[1].mxu1 }
  0xf7   :  { %v958_v47 = vadd.f32 %v2217_v40, %v501_v45  ;;  %v990_v48 = vadd.f32 %v2217_v40, %v629_v46  ;;  %v1957_v49 = vpop.f32.mrb[2].mxu0  ;;  %v1989_v50 = vpop.f32.mrb[2].mxu1 }
  0xf8   :  { %vm1024_vm0 = vcmp.ge.f32.partialorder %v960_v43, 0.0  ;;  %v1088_v51 = vmul.f32 0.2, %v960_v43  ;;  %vm1056_vm1 = vcmp.ge.f32.partialorder %v992_v44, 0.0  ;;  %v1120_v52 = vmul.f32 0.2, %v992_v44 }
  0xf9   :  { %vm1022_vm2 = vcmp.ge.f32.partialorder %v958_v47, 0.0  ;;  %v1086_v53 = vmul.f32 0.2, %v958_v47  ;;  %vm1054_vm3 = vcmp.ge.f32.partialorder %v990_v48, 0.0  ;;  %v1118_v54 = vmul.f32 0.2, %v990_v48 }
  0xfa   :  { %v961_v55 = vadd.f32 %v1957_v49, %v2217_v40  ;;  %v993_v56 = vadd.f32 %v1989_v50, %v2217_v40  ;;  %v504_v57 = vpop.f32.mrb[3].mxu0  ;;  %v632_v58 = vpop.f32.mrb[3].mxu1  ;;  %v1152_v59 = vsel %vm1024_vm0, %v960_v43, %v1088_v51  ;;  %v1184_v60 = vsel %vm1056_vm1, %v992_v44, %v1120_v52 }
  0xfb   :  { %v959_v61 = vadd.f32 %v2217_v40, %v504_v57  ;;  %v991_v62 = vadd.f32 %v2217_v40, %v632_v58  ;;  %v1150_v3 = vsel %vm1022_vm2, %v958_v47, %v1086_v53  ;;  %v1182_v4 = vsel %vm1054_vm3, %v990_v48, %v1118_v54 }
  0xfc   :  { %vm1025_vm4 = vcmp.ge.f32.partialorder %v961_v55, 0.0  ;;  %v1089_v63 = vmul.f32 0.2, %v961_v55  ;;  %vm1057_vm5 = vcmp.ge.f32.partialorder %v993_v56, 0.0  ;;  %v1121_v0 = vmul.f32 0.2, %v993_v56 }
  0xfd   :  { %vm1023_vm6 = vcmp.ge.f32.partialorder %v959_v61, 0.0  ;;  %v1087_v1 = vmul.f32 0.2, %v959_v61  ;;  %vm1055_vm7 = vcmp.ge.f32.partialorder %v991_v62, 0.0  ;;  %v1119_v2 = vmul.f32 0.2, %v991_v62 }
  0xfe   :  { %v1153_v5 = vsel %vm1025_vm4, %v961_v55, %v1089_v63  ;;  %v1185_v6 = vsel %vm1057_vm5, %v993_v56, %v1121_v0  ;;  %v1960_v7 = vpop.f32.mrb[4].mxu0  ;;  %v1992_v8 = vpop.f32.mrb[4].mxu1 }
  0xff   :  { %v1715_v9 = vpack.c.bf16 %v1153_v5, %v1152_v59  ;;  %v1795_v10 = vpack.c.bf16 %v1185_v6, %v1184_v60  ;;  %v1151_v11 = vsel %vm1023_vm6, %v959_v61, %v1087_v1  ;;  %v1183_v12 = vsel %vm1055_vm7, %v991_v62, %v1119_v2  ;;  %v517_v13 = vpop.f32.mrb[5].mxu0  ;;  %v645_v14 = vpop.f32.mrb[5].mxu1 }
 0x100   :  { %v1710_v15 = vpack.c.bf16 %v1151_v11, %v1150_v3  ;;  %v1790_v16 = vpack.c.bf16 %v1183_v12, %v1182_v4  ;;  %v964_v17 = vadd.f32 %v1960_v7, %v2217_v40  ;;  %v996_v18 = vadd.f32 %v1992_v8, %v2217_v40  ;;  %v1961_v19 = vpop.f32.mrb[6].mxu0  ;;  %v1993_v20 = vpop.f32.mrb[6].mxu1 }
 0x101   :  { %1867 = vst [vmem:[%s2391_s3 + $0x8] sm:$0xff] %v1715_v9   ;;  %1883 = vst [vmem:[%s2391_s3 + $0x88] sm:$0xff] %v1795_v10   ;;  %v962_v21 = vadd.f32 %v2217_v40, %v517_v13  ;;  %v994_v22 = vadd.f32 %v2217_v40, %v645_v14  ;;  %v965_v23 = vadd.f32 %v1961_v19, %v2217_v40  ;;  %v520_v25 = vpop.f32.mrb[7].mxu0  ;;  %v648_v26 = vpop.f32.mrb[7].mxu1 }
 0x102   :  { %v997_v24 = vadd.f32 %v1993_v20, %v2217_v40  ;;  %1711 = vst [vmem:[%s2391_s3] sm:$0xff] %v1710_v15   ;;  %1882 = vst [vmem:[%s2391_s3 + $0x80] sm:$0xff] %v1790_v16   ;;  %vm1028_vm8 = vcmp.ge.f32.partialorder %v964_v17, 0.0  ;;  %v1092_v27 = vmul.f32 0.2, %v964_v17  ;;  %vm1060_vm9 = vcmp.ge.f32.partialorder %v996_v18, 0.0 }
 0x103   :  { %v1124_v28 = vmul.f32 0.2, %v996_v18  ;;  %vm1026_vm10 = vcmp.ge.f32.partialorder %v962_v21, 0.0  ;;  %v1090_v29 = vmul.f32 0.2, %v962_v21  ;;  %vm1058_vm11 = vcmp.ge.f32.partialorder %v994_v22, 0.0 }
 0x104   :  { %v1122_v30 = vmul.f32 0.2, %v994_v22  ;;  %v1156_v31 = vsel %vm1028_vm8, %v964_v17, %v1092_v27  ;;  %vm1029_vm12 = vcmp.ge.f32.partialorder %v965_v23, 0.0  ;;  %v1093_v33 = vmul.f32 0.2, %v965_v23 }
 0x105   :  { %v1188_v32 = vsel %vm1060_vm9, %v996_v18, %v1124_v28  ;;  %v1154_v34 = vsel %vm1026_vm10, %v962_v21, %v1090_v29  ;;  %vm1061_vm13 = vcmp.ge.f32.partialorder %v997_v24, 0.0  ;;  %v1125_v36 = vmul.f32 0.2, %v997_v24  ;;  %v1964_v37 = vpop.f32.mrb[8].mxu0  ;;  %v1996_v38 = vpop.f32.mrb[8].mxu1 }
 0x106   :  { %v1186_v35 = vsel %vm1058_vm11, %v994_v22, %v1122_v30  ;;  %v1157_v39 = vsel %vm1029_vm12, %v965_v23, %v1093_v33  ;;  %v963_v41 = vadd.f32 %v2217_v40, %v520_v25  ;;  %v995_v42 = vadd.f32 %v2217_v40, %v648_v26  ;;  %v533_v44 = vpop.f32.mrb[9].mxu0  ;;  %v661_v45 = vpop.f32.mrb[9].mxu1 }
 0x107   :  { %v968_v43 = vadd.f32 %v1964_v37, %v2217_v40  ;;  %v1725_v46 = vpack.c.bf16 %v1157_v39, %v1156_v31  ;;  %v1189_v47 = vsel %vm1061_vm13, %v997_v24, %v1125_v36  ;;  %v1000_v48 = vadd.f32 %v1996_v38, %v2217_v40  ;;  %v1965_v50 = vpop.f32.mrb[10].mxu0  ;;  %v1997_v51 = vpop.f32.mrb[10].mxu1 }
 0x108   :  { %v966_v49 = vadd.f32 %v2217_v40, %v533_v44  ;;  %v1805_v52 = vpack.c.bf16 %v1189_v47, %v1188_v32  ;;  %vm1027_vm14 = vcmp.ge.f32.partialorder %v963_v41, 0.0  ;;  %v1091_v53 = vmul.f32 0.2, %v963_v41  ;;  %v536_v54 = vpop.f32.mrb[11].mxu0  ;;  %v664_v55 = vpop.f32.mrb[11].mxu1 }
 0x109   :  { %vm1059_vm15 = vcmp.ge.f32.partialorder %v995_v42, 0.0  ;;  %1869 = vst [vmem:[%s2391_s3 + $0x18] sm:$0xff] %v1725_v46   ;;  %v1123_v56 = vmul.f32 0.2, %v995_v42  ;;  %vm1032_vm0 = vcmp.ge.f32.partialorder %v968_v43, 0.0  ;;  %vm1064_vm1 = vcmp.ge.f32.partialorder %v1000_v48, 0.0 }
 0x10a   :  { %v1096_v57 = vmul.f32 0.2, %v968_v43  ;;  %1885 = vst [vmem:[%s2391_s3 + $0x98] sm:$0xff] %v1805_v52   ;;  %v1155_v58 = vsel %vm1027_vm14, %v963_v41, %v1091_v53  ;;  %v1128_v59 = vmul.f32 0.2, %v1000_v48  ;;  %vm1030_vm2 = vcmp.ge.f32.partialorder %v966_v49, 0.0 }
 0x10b   :  { %v1094_v60 = vmul.f32 0.2, %v966_v49  ;;  %v1720_v61 = vpack.c.bf16 %v1155_v58, %v1154_v34  ;;  %v1187_v62 = vsel %vm1059_vm15, %v995_v42, %v1123_v56  ;;  %v998_v0 = vadd.f32 %v2217_v40, %v661_v45 }
 0x10c   :  { %v1160_v63 = vsel %vm1032_vm0, %v968_v43, %v1096_v57  ;;  %v1800_v1 = vpack.c.bf16 %v1187_v62, %v1186_v35  ;;  %v1192_v2 = vsel %vm1064_vm1, %v1000_v48, %v1128_v59  ;;  %v969_v4 = vadd.f32 %v1965_v50, %v2217_v40 }
 0x10d   :  { %v1158_v3 = vsel %vm1030_vm2, %v966_v49, %v1094_v60  ;;  %1868 = vst [vmem:[%s2391_s3 + $0x10] sm:$0xff] %v1720_v61   ;;  %vm1062_vm3 = vcmp.ge.f32.partialorder %v998_v0, 0.0  ;;  %v1126_v5 = vmul.f32 0.2, %v998_v0  ;;  %v1001_v6 = vadd.f32 %v1997_v51, %v2217_v40  ;;  %v1968_v8 = vpop.f32.mrb[12].mxu0  ;;  %v2000_v9 = vpop.f32.mrb[12].mxu1 }
 0x10e   :  { %v967_v7 = vadd.f32 %v2217_v40, %v536_v54  ;;  %1884 = vst [vmem:[%s2391_s3 + $0x90] sm:$0xff] %v1800_v1   ;;  %vm1033_vm4 = vcmp.ge.f32.partialorder %v969_v4, 0.0  ;;  %v1097_v10 = vmul.f32 0.2, %v969_v4  ;;  %v999_v11 = vadd.f32 %v2217_v40, %v664_v55  ;;  %v549_v13 = vpop.f32.mrb[13].mxu0  ;;  %v677_v14 = vpop.f32.mrb[13].mxu1 }
 0x10f   :  { %v972_v12 = vadd.f32 %v1968_v8, %v2217_v40  ;;  %v1190_v15 = vsel %vm1062_vm3, %v998_v0, %v1126_v5  ;;  %vm1065_vm5 = vcmp.ge.f32.partialorder %v1001_v6, 0.0  ;;  %v1129_v16 = vmul.f32 0.2, %v1001_v6  ;;  %v1969_v17 = vpop.f32.mrb[14].mxu0  ;;  %v2001_v18 = vpop.f32.mrb[14].mxu1 }
 0x110   :  { %vm1031_vm6 = vcmp.ge.f32.partialorder %v967_v7, 0.0  ;;  %v1161_v19 = vsel %vm1033_vm4, %v969_v4, %v1097_v10  ;;  %v1095_v20 = vmul.f32 0.2, %v967_v7  ;;  %vm1063_vm7 = vcmp.ge.f32.partialorder %v999_v11, 0.0  ;;  %v552_v22 = vpop.f32.mrb[15].mxu0  ;;  %v680_v26 = vpop.f32.mrb[15].mxu1 }
 0x111   :  { %v1127_v21 = vmul.f32 0.2, %v999_v11  ;;  %v1735_v23 = vpack.c.bf16 %v1161_v19, %v1160_v63  ;;  %v1193_v24 = vsel %vm1065_vm5, %v1001_v6, %v1129_v16  ;;  %vm1036_vm8 = vcmp.ge.f32.partialorder %v972_v12, 0.0 }
 0x112   :  { %v1100_v25 = vmul.f32 0.2, %v972_v12  ;;  %v1815_v27 = vpack.c.bf16 %v1193_v24, %v1192_v2  ;;  %v1159_v28 = vsel %vm1031_vm6, %v967_v7, %v1095_v20  ;;  %v1004_v30 = vadd.f32 %v2000_v9, %v2217_v40 }
 0x113   :  { %v1191_v29 = vsel %vm1063_vm7, %v999_v11, %v1127_v21  ;;  %1871 = vst [vmem:[%s2391_s3 + $0x28] sm:$0xff] %v1735_v23   ;;  %v1730_v31 = vpack.c.bf16 %v1159_v28, %v1158_v3  ;;  %v970_v34 = vadd.f32 %v2217_v40, %v549_v13  ;;  %v1002_v36 = vadd.f32 %v2217_v40, %v677_v14 }
 0x114   :  { %v1810_v32 = vpack.c.bf16 %v1191_v29, %v1190_v15  ;;  %v1164_v33 = vsel %vm1036_vm8, %v972_v12, %v1100_v25  ;;  %1887 = vst [vmem:[%s2391_s3 + $0xa8] sm:$0xff] %v1815_v27   ;;  %vm1068_vm9 = vcmp.ge.f32.partialorder %v1004_v30, 0.0  ;;  %v1132_v35 = vmul.f32 0.2, %v1004_v30 }
 0x115   :  { %v973_v37 = vadd.f32 %v1969_v17, %v2217_v40  ;;  %1870 = vst [vmem:[%s2391_s3 + $0x20] sm:$0xff] %v1730_v31   ;;  %vm1034_vm10 = vcmp.ge.f32.partialorder %v970_v34, 0.0  ;;  %v1098_v38 = vmul.f32 0.2, %v970_v34  ;;  %v1005_v39 = vadd.f32 %v2001_v18, %v2217_v40  ;;  %v1972_v42 = vpop.f32.mrb[16].mxu0  ;;  %v2004_v43 = vpop.f32.mrb[16].mxu1 }
 0x116   :  { %1886 = vst [vmem:[%s2391_s3 + $0xa0] sm:$0xff] %v1810_v32   ;;  %v971_v41 = vadd.f32 %v2217_v40, %v552_v22  ;;  %v1196_v44 = vsel %vm1068_vm9, %v1004_v30, %v1132_v35  ;;  %vm1066_vm11 = vcmp.ge.f32.partialorder %v1002_v36, 0.0  ;;  %v1130_v45 = vmul.f32 0.2, %v1002_v36  ;;  %v565_v46 = vpop.f32.mrb[17].mxu0  ;;  %v693_v47 = vpop.f32.mrb[17].mxu1 }
 0x117   :  { %vm1037_vm12 = vcmp.ge.f32.partialorder %v973_v37, 0.0  ;;  %v1162_v48 = vsel %vm1034_vm10, %v970_v34, %v1098_v38  ;;  %v1101_v49 = vmul.f32 0.2, %v973_v37  ;;  %vm1069_vm13 = vcmp.ge.f32.partialorder %v1005_v39, 0.0  ;;  %v1973_v51 = vpop.f32.mrb[18].mxu0  ;;  %v2005_v55 = vpop.f32.mrb[18].mxu1 }
 0x118   :  { %v1133_v50 = vmul.f32 0.2, %v1005_v39  ;;  %v1194_v52 = vsel %vm1066_vm11, %v1002_v36, %v1130_v45  ;;  %vm1035_vm14 = vcmp.ge.f32.partialorder %v971_v41, 0.0  ;;  %v1099_v53 = vmul.f32 0.2, %v971_v41  ;;  %v568_v56 = vpop.f32.mrb[19].mxu0 }
 0x119   :  { %v1003_v54 = vadd.f32 %v2217_v40, %v680_v26  ;;  %v1165_v57 = vsel %vm1037_vm12, %v973_v37, %v1101_v49  ;;  %v976_v59 = vadd.f32 %v1972_v42, %v2217_v40  ;;  %v1008_v60 = vadd.f32 %v2004_v43, %v2217_v40  ;;  %v696_v61 = vpop.f32.mrb[19].mxu1 }
 0x11a   :  { %v1197_v58 = vsel %vm1069_vm13, %v1005_v39, %v1133_v50  ;;  %v1745_v62 = vpack.c.bf16 %v1165_v57, %v1164_v33  ;;  %v1163_v0 = vsel %vm1035_vm14, %v971_v41, %v1099_v53  ;;  %v974_v5 = vadd.f32 %v2217_v40, %v565_v46 }
 0x11b   :  { %v1825_v63 = vpack.c.bf16 %v1197_v58, %v1196_v44  ;;  %vm1067_vm15 = vcmp.ge.f32.partialorder %v1003_v54, 0.0  ;;  %v1740_v1 = vpack.c.bf16 %v1163_v0, %v1162_v48  ;;  %v1131_v2 = vmul.f32 0.2, %v1003_v54 }
 0x11c   :  { %vm1040_vm0 = vcmp.ge.f32.partialorder %v976_v59, 0.0  ;;  %v1104_v3 = vmul.f32 0.2, %v976_v59  ;;  %1873 = vst [vmem:[%s2391_s3 + $0x38] sm:$0xff] %v1745_v62   ;;  %vm1072_vm1 = vcmp.ge.f32.partialorder %v1008_v60, 0.0  ;;  %v1006_v6 = vadd.f32 %v2217_v40, %v693_v47 }
 0x11d   :  { %1889 = vst [vmem:[%s2391_s3 + $0xb8] sm:$0xff] %v1825_v63   ;;  %v1136_v4 = vmul.f32 0.2, %v1008_v60  ;;  %1872 = vst [vmem:[%s2391_s3 + $0x30] sm:$0xff] %v1740_v1   ;;  %v1195_v7 = vsel %vm1067_vm15, %v1003_v54, %v1131_v2  ;;  %v977_v9 = vadd.f32 %v1973_v51, %v2217_v40  ;;  %v1009_v10 = vadd.f32 %v2005_v55, %v2217_v40  ;;  %v1976_v11 = vpop.f32.mrb[20].mxu0  ;;  %v2008_v12 = vpop.f32.mrb[20].mxu1 }
 0x11e   :  { %v1168_v8 = vsel %vm1040_vm0, %v976_v59, %v1104_v3  ;;  %v1820_v13 = vpack.c.bf16 %v1195_v7, %v1194_v52  ;;  %vm1038_vm2 = vcmp.ge.f32.partialorder %v974_v5, 0.0  ;;  %v1102_v15 = vmul.f32 0.2, %v974_v5  ;;  %v581_v16 = vpop.f32.mrb[21].mxu0  ;;  %v709_v17 = vpop.f32.mrb[21].mxu1 }
 0x11f   :  { %v1200_v14 = vsel %vm1072_vm1, %v1008_v60, %v1136_v4  ;;  %vm1070_vm3 = vcmp.ge.f32.partialorder %v1006_v6, 0.0  ;;  %v1134_v18 = vmul.f32 0.2, %v1006_v6  ;;  %vm1041_vm4 = vcmp.ge.f32.partialorder %v977_v9, 0.0  ;;  %v1977_v23 = vpop.f32.mrb[22].mxu0  ;;  %v2009_v24 = vpop.f32.mrb[22].mxu1 }
 0x120   :  { %v1105_v19 = vmul.f32 0.2, %v977_v9  ;;  %1888 = vst [vmem:[%s2391_s3 + $0xb0] sm:$0xff] %v1820_v13   ;;  %v1166_v20 = vsel %vm1038_vm2, %v974_v5, %v1102_v15  ;;  %vm1073_vm5 = vcmp.ge.f32.partialorder %v1009_v10, 0.0  ;;  %v1137_v21 = vmul.f32 0.2, %v1009_v10 }
 0x121   :  { %v975_v22 = vadd.f32 %v2217_v40, %v568_v56  ;;  %v1198_v25 = vsel %vm1070_vm3, %v1006_v6, %v1134_v18  ;;  %v1007_v27 = vadd.f32 %v2217_v40, %v696_v61  ;;  %v980_v28 = vadd.f32 %v1976_v11, %v2217_v40  ;;  %v584_v29 = vpop.f32.mrb[23].mxu0  ;;  %v712_v30 = vpop.f32.mrb[23].mxu1 }
 0x122   :  { %v1169_v26 = vsel %vm1041_vm4, %v977_v9, %v1105_v19  ;;  %v1201_v32 = vsel %vm1073_vm5, %v1009_v10, %v1137_v21  ;;  %v1012_v38 = vadd.f32 %v2008_v12, %v2217_v40  ;;  %v978_v39 = vadd.f32 %v2217_v40, %v581_v16 }
 0x123   :  { %v1755_v31 = vpack.c.bf16 %v1169_v26, %v1168_v8  ;;  %vm1039_vm6 = vcmp.ge.f32.partialorder %v975_v22, 0.0  ;;  %v1103_v33 = vmul.f32 0.2, %v975_v22  ;;  %v1835_v34 = vpack.c.bf16 %v1201_v32, %v1200_v14 }
 0x124   :  { %vm1071_vm7 = vcmp.ge.f32.partialorder %v1007_v27, 0.0  ;;  %v1135_v35 = vmul.f32 0.2, %v1007_v27  ;;  %vm1044_vm8 = vcmp.ge.f32.partialorder %v980_v28, 0.0  ;;  %v1108_v37 = vmul.f32 0.2, %v980_v28 }
 0x125   :  { %1875 = vst [vmem:[%s2391_s3 + $0x48] sm:$0xff] %v1755_v31   ;;  %v1167_v36 = vsel %vm1039_vm6, %v975_v22, %v1103_v33  ;;  %1891 = vst [vmem:[%s2391_s3 + $0xc8] sm:$0xff] %v1835_v34   ;;  %v1010_v43 = vadd.f32 %v2217_v40, %v709_v17  ;;  %v981_v44 = vadd.f32 %v1977_v23, %v2217_v40  ;;  %v1980_v45 = vpop.f32.mrb[24].mxu0  ;;  %v2012_v46 = vpop.f32.mrb[24].mxu1  ;;  %vm1076_vm9 = vcmp.ge.f32.partialorder %v1012_v38, 0.0 }
 0x126   :  { %v1750_v41 = vpack.c.bf16 %v1167_v36, %v1166_v20  ;;  %v1199_v42 = vsel %vm1071_vm7, %v1007_v27, %v1135_v35  ;;  %v1140_v48 = vmul.f32 0.2, %v1012_v38  ;;  %v597_v49 = vpop.f32.mrb[25].mxu0  ;;  %v725_v50 = vpop.f32.mrb[25].mxu1  ;;  %v1172_v51 = vsel %vm1044_vm8, %v980_v28, %v1108_v37 }
 0x127   :  { %v1830_v47 = vpack.c.bf16 %v1199_v42, %v1198_v25  ;;  %vm1042_vm10 = vcmp.ge.f32.partialorder %v978_v39, 0.0  ;;  %v1106_v52 = vmul.f32 0.2, %v978_v39  ;;  %v1138_v53 = vmul.f32 0.2, %v1010_v43  ;;  %v1981_v56 = vpop.f32.mrb[26].mxu0 }
 0x128   :  { %1874 = vst [vmem:[%s2391_s3 + $0x40] sm:$0xff] %v1750_v41   ;;  %vm1074_vm11 = vcmp.ge.f32.partialorder %v1010_v43, 0.0  ;;  %vm1045_vm12 = vcmp.ge.f32.partialorder %v981_v44, 0.0  ;;  %v1109_v54 = vmul.f32 0.2, %v981_v44  ;;  %v1013_v55 = vadd.f32 %v2009_v24, %v2217_v40  ;;  %v2013_v57 = vpop.f32.mrb[26].mxu1 }
 0x129   :  { %1890 = vst [vmem:[%s2391_s3 + $0xc0] sm:$0xff] %v1830_v47   ;;  %v1204_v58 = vsel %vm1076_vm9, %v1012_v38, %v1140_v48  ;;  %v1170_v59 = vsel %vm1042_vm10, %v978_v39, %v1106_v52  ;;  %v979_v60 = vadd.f32 %v2217_v40, %v584_v29  ;;  %v1011_v61 = vadd.f32 %v2217_v40, %v712_v30  ;;  %v600_v62 = vpop.f32.mrb[27].mxu0  ;;  %v728_v63 = vpop.f32.mrb[27].mxu1 }
 0x12a   :  { %v1173_v0 = vsel %vm1045_vm12, %v981_v44, %v1109_v54  ;;  %vm1077_vm13 = vcmp.ge.f32.partialorder %v1013_v55, 0.0  ;;  %v1141_v1 = vmul.f32 0.2, %v1013_v55  ;;  %v984_v2 = vadd.f32 %v1980_v45, %v2217_v40 }
 0x12b   :  { %v1765_v3 = vpack.c.bf16 %v1173_v0, %v1172_v51  ;;  %vm1043_vm14 = vcmp.ge.f32.partialorder %v979_v60, 0.0  ;;  %v1107_v4 = vmul.f32 0.2, %v979_v60  ;;  %vm1075_vm15 = vcmp.ge.f32.partialorder %v1011_v61, 0.0 }
 0x12c   :  { %v1205_v5 = vsel %vm1077_vm13, %v1013_v55, %v1141_v1  ;;  %v1139_v6 = vmul.f32 0.2, %v1011_v61  ;;  %vm1048_vm0 = vcmp.ge.f32.partialorder %v984_v2, 0.0  ;;  %v1112_v7 = vmul.f32 0.2, %v984_v2 }
 0x12d   :  { %1877 = vst [vmem:[%s2391_s3 + $0x58] sm:$0xff] %v1765_v3   ;;  %v1845_v8 = vpack.c.bf16 %v1205_v5, %v1204_v58  ;;  %v1171_v9 = vsel %vm1043_vm14, %v979_v60, %v1107_v4  ;;  %v1016_v10 = vadd.f32 %v2012_v46, %v2217_v40  ;;  %v982_v11 = vadd.f32 %v2217_v40, %v597_v49  ;;  %v1984_v12 = vpop.f32.mrb[28].mxu0  ;;  %v2016_v13 = vpop.f32.mrb[28].mxu1 }
 0x12e   :  { %v1202_v14 = vsel %vm1074_vm11, %v1010_v43, %v1138_v53  ;;  %v1760_v15 = vpack.c.bf16 %v1171_v9, %v1170_v59  ;;  %v1203_v16 = vsel %vm1075_vm15, %v1011_v61, %v1139_v6  ;;  %v1014_v17 = vadd.f32 %v2217_v40, %v725_v50  ;;  %v613_v18 = vpop.f32.mrb[29].mxu0  ;;  %v741_v19 = vpop.f32.mrb[29].mxu1 }
 0x12f   :  { %1893 = vst [vmem:[%s2391_s3 + $0xd8] sm:$0xff] %v1845_v8   ;;  %v1840_v20 = vpack.c.bf16 %v1203_v16, %v1202_v14  ;;  %vm1080_vm1 = vcmp.ge.f32.partialorder %v1016_v10, 0.0  ;;  %v1144_v21 = vmul.f32 0.2, %v1016_v10  ;;  %vm1046_vm2 = vcmp.ge.f32.partialorder %v982_v11, 0.0  ;;  %v1985_v22 = vpop.f32.mrb[30].mxu0 }
 0x130   :  { %v2017_v23 = vpop.f32.mrb[30].mxu1  ;;  %1876 = vst [vmem:[%s2391_s3 + $0x50] sm:$0xff] %v1760_v15   ;;  %v1176_v24 = vsel %vm1048_vm0, %v984_v2, %v1112_v7  ;;  %v1110_v25 = vmul.f32 0.2, %v982_v11  ;;  %vm1078_vm3 = vcmp.ge.f32.partialorder %v1014_v17, 0.0  ;;  %v985_v26 = vadd.f32 %v1981_v56, %v2217_v40  ;;  %v616_v27 = vpop.f32.mrb[31].mxu0 }
 0x131   :  { %1892 = vst [vmem:[%s2391_s3 + $0xd0] sm:$0xff] %v1840_v20   ;;  %v1142_v28 = vmul.f32 0.2, %v1014_v17  ;;  %v1017_v29 = vadd.f32 %v2013_v57, %v2217_v40  ;;  %v983_v30 = vadd.f32 %v2217_v40, %v600_v62  ;;  %v1015_v31 = vadd.f32 %v2217_v40, %v728_v63  ;;  %v744_v32 = vpop.f32.mrb[31].mxu1 }
 0x132   :  { %v1208_v33 = vsel %vm1080_vm1, %v1016_v10, %v1144_v21  ;;  %v1174_v34 = vsel %vm1046_vm2, %v982_v11, %v1110_v25  ;;  %vm1049_vm4 = vcmp.ge.f32.partialorder %v985_v26, 0.0  ;;  %v1113_v35 = vmul.f32 0.2, %v985_v26 }
 0x133   :  { %vm1081_vm5 = vcmp.ge.f32.partialorder %v1017_v29, 0.0  ;;  %v1145_v36 = vmul.f32 0.2, %v1017_v29  ;;  %vm1047_vm6 = vcmp.ge.f32.partialorder %v983_v30, 0.0  ;;  %v1111_v37 = vmul.f32 0.2, %v983_v30 }
 0x134   :  { %v1177_v38 = vsel %vm1049_vm4, %v985_v26, %v1113_v35  ;;  %vm1079_vm7 = vcmp.ge.f32.partialorder %v1015_v31, 0.0  ;;  %v1143_v39 = vmul.f32 0.2, %v1015_v31  ;;  %v988_v41 = vadd.f32 %v1984_v12, %v2217_v40 }
 0x135   :  { %v1775_v42 = vpack.c.bf16 %v1177_v38, %v1176_v24  ;;  %v1209_v43 = vsel %vm1081_vm5, %v1017_v29, %v1145_v36  ;;  %v1175_v44 = vsel %vm1047_vm6, %v983_v30, %v1111_v37  ;;  %v1020_v45 = vadd.f32 %v2016_v13, %v2217_v40 }
 0x136   :  { %v1206_v46 = vsel %vm1078_vm3, %v1014_v17, %v1142_v28  ;;  %v1855_v47 = vpack.c.bf16 %v1209_v43, %v1208_v33  ;;  %v1770_v48 = vpack.c.bf16 %v1175_v44, %v1174_v34  ;;  %v1207_v49 = vsel %vm1079_vm7, %v1015_v31, %v1143_v39 }
 0x137   :  { %1879 = vst [vmem:[%s2391_s3 + $0x68] sm:$0xff] %v1775_v42   ;;  %v1850_v50 = vpack.c.bf16 %v1207_v49, %v1206_v46  ;;  %vm1052_vm8 = vcmp.ge.f32.partialorder %v988_v41, 0.0  ;;  %v1116_v51 = vmul.f32 0.2, %v988_v41  ;;  %v1148_v52 = vmul.f32 0.2, %v1020_v45 }
 0x138   :  { %1895 = vst [vmem:[%s2391_s3 + $0xe8] sm:$0xff] %v1855_v47   ;;  %1878 = vst [vmem:[%s2391_s3 + $0x60] sm:$0xff] %v1770_v48   ;;  %v986_v53 = vadd.f32 %v2217_v40, %v613_v18  ;;  %v1018_v54 = vadd.f32 %v2217_v40, %v741_v19  ;;  %v989_v55 = vadd.f32 %v1985_v22, %v2217_v40  ;;  %vm1084_vm9 = vcmp.ge.f32.partialorder %v1020_v45, 0.0 }
 0x139   :  { %v1021_v56 = vadd.f32 %v2017_v23, %v2217_v40  ;;  %1894 = vst [vmem:[%s2391_s3 + $0xe0] sm:$0xff] %v1850_v50   ;;  %v987_v57 = vadd.f32 %v2217_v40, %v616_v27  ;;  %v1019_v58 = vadd.f32 %v2217_v40, %v744_v32  ;;  %v1180_v59 = vsel %vm1052_vm8, %v988_v41, %v1116_v51 }
 0x13a   :  { %vm1050_vm10 = vcmp.ge.f32.partialorder %v986_v53, 0.0  ;;  %v1114_v60 = vmul.f32 0.2, %v986_v53  ;;  %v1146_v61 = vmul.f32 0.2, %v1018_v54  ;;  %vm1053_vm11 = vcmp.ge.f32.partialorder %v989_v55, 0.0 }
 0x13b   :  { %v1117_v62 = vmul.f32 0.2, %v989_v55  ;;  %vm1085_vm12 = vcmp.ge.f32.partialorder %v1021_v56, 0.0  ;;  %v1149_v63 = vmul.f32 0.2, %v1021_v56  ;;  %v1212_v0 = vsel %vm1084_vm9, %v1020_v45, %v1148_v52 }
 0x13c   :  { %vm1082_vm13 = vcmp.ge.f32.partialorder %v1018_v54, 0.0  ;;  %vm1051_vm14 = vcmp.ge.f32.partialorder %v987_v57, 0.0  ;;  %v1115_v1 = vmul.f32 0.2, %v987_v57  ;;  %vm1083_vm15 = vcmp.ge.f32.partialorder %v1019_v58, 0.0 }
 0x13d   :  { %v1181_v2 = vsel %vm1053_vm11, %v989_v55, %v1117_v62  ;;  %v1213_v3 = vsel %vm1085_vm12, %v1021_v56, %v1149_v63  ;;  %v1147_v4 = vmul.f32 0.2, %v1019_v58  ;;  %v1178_v5 = vsel %vm1050_vm10, %v986_v53, %v1114_v60 }
 0x13e   :  { %v1785_v6 = vpack.c.bf16 %v1181_v2, %v1180_v59  ;;  %v1865_v7 = vpack.c.bf16 %v1213_v3, %v1212_v0  ;;  %v1179_v40 = vsel %vm1051_vm14, %v987_v57, %v1115_v1  ;;  %v1210_v8 = vsel %vm1082_vm13, %v1018_v54, %v1146_v61 }
 0x13f   :  { %v1780_v9 = vpack.c.bf16 %v1179_v40, %v1178_v5  ;;  %v1211_v10 = vsel %vm1083_vm15, %v1019_v58, %v1147_v4 }
 0x140   :  { %1881 = vst [vmem:[%s2391_s3 + $0x78] sm:$0xff] %v1785_v6   ;;  %1897 = vst [vmem:[%s2391_s3 + $0xf8] sm:$0xff] %v1865_v7   ;;  %v1860_v11 = vpack.c.bf16 %v1211_v10, %v1210_v8 }
 0x141   :  { %1880 = vst [vmem:[%s2391_s3 + $0x70] sm:$0xff] %v1780_v9  }
 0x142   :  { %1896 = vst [vmem:[%s2391_s3 + $0xf0] sm:$0xff] %v1860_v11  }

// kernel: feature_extractor_forward.8
= control target key start
LH: loop header
LB: loop body
LE: loop exit
PB: predicated region body
PF: predicated region fallthrough
CT: control target
= control target key end

     0   :  { %v517_v16 = vmov 0.0   ;;  %s649_s1 = inlined_call_operand.vmem [shape: bf16[128,128], index: 1, kind: input, shape index: {}]   ;;  %s650_s0 = inlined_call_operand.vmem [shape: bf16[128,128], index: 0, kind: input, shape index: {}]   ;;  %s651_s3 = inlined_call_operand.vmem [shape: f32[2,128], index: 3, kind: output, shape index: {1}]   ;;  %s652_s2 = inlined_call_operand.vmem [shape: f32[128,128], index: 2, kind: output, shape index: {0}]  }
   0x1   :  { %v501_v0 = vld [vmem:[%s649_s1] sm:$0xff]   ;;  %v502_v1 = vld [vmem:[%s649_s1 + $0x8] sm:$0xff]   ;;  %v503_v2 = vld [vmem:[%s649_s1 + $0x10] sm:$0xff]   ;;  %39 = vst [vmem:[%s651_s3] sm:$0x3] %v517_v16 }
   0x2   :  { %452 = vmatprep.subr.bf16.mxu0 %v501_v0  ;;  %484 = vmatprep.subr.bf16.mxu1 %v501_v0  ;;  %v504_v3 = vld [vmem:[%s649_s1 + $0x18] sm:$0xff]   ;;  %v509_v4 = vld [vmem:[%s650_s0] sm:$0xff]   ;;  %v506_v7 = vld [vmem:[%s649_s1 + $0x28] sm:$0xff]  }
   0x3   :  { %453 = vmatpush3.bf16.msra.mxu0 %v501_v0  ;;  %492 = vmatpush3.bf16.msra.mxu1 %v501_v0  ;;  %v505_v5 = vld [vmem:[%s649_s1 + $0x20] sm:$0xff]   ;;  %v507_v8 = vld [vmem:[%s649_s1 + $0x30] sm:$0xff]   ;;  %v508_v9 = vld [vmem:[%s649_s1 + $0x38] sm:$0xff]  }
   0x4   :  { %454 = vmatprep.subr.bf16.mxu0 %v502_v1  ;;  %485 = vmatprep.subr.bf16.mxu1 %v502_v1  ;;  %v513_v6 = vld [vmem:[%s650_s0 + $0x20] sm:$0xff]   ;;  %v510_v10 = vld [vmem:[%s650_s0 + $0x8] sm:$0xff]   ;;  %v511_v12 = vld [vmem:[%s650_s0 + $0x10] sm:$0xff]  }
   0x5   :  { %468 = vmatprep.mubr.bf16.mxu0 %v509_v4  ;;  %476 = vmatprep.mubr.bf16.mxu1 %v513_v6  ;;  %v514_v11 = vld [vmem:[%s650_s0 + $0x28] sm:$0xff]   ;;  %v515_v13 = vld [vmem:[%s650_s0 + $0x30] sm:$0xff]   ;;  %v512_v14 = vld [vmem:[%s650_s0 + $0x18] sm:$0xff]  }
   0x6   :  { %v516_v15 = vld [vmem:[%s650_s0 + $0x38] sm:$0xff]  }
   0x7   :  { %455 = vmatpush3.bf16.msra.mxu0 %v502_v1  ;;  %493 = vmatpush3.bf16.msra.mxu1 %v502_v1 }
   0x8   :  { %456 = vmatprep.subr.bf16.mxu0 %v503_v2  ;;  %486 = vmatprep.subr.bf16.mxu1 %v503_v2 }
   0xb   :  { %457 = vmatpush3.bf16.msra.mxu0 %v503_v2  ;;  %494 = vmatpush3.bf16.msra.mxu1 %v503_v2 }
   0xc   :  { %458 = vmatprep.subr.bf16.mxu0 %v504_v3  ;;  %487 = vmatprep.subr.bf16.mxu1 %v504_v3 }
   0xf   :  { %459 = vmatpush3.bf16.msra.mxu0 %v504_v3  ;;  %495 = vmatpush3.bf16.msra.mxu1 %v504_v3 }
  0x10   :  { %460 = vmatprep.subr.bf16.mxu0 %v505_v5  ;;  %488 = vmatprep.subr.bf16.mxu1 %v505_v5 }
  0x13   :  { %461 = vmatpush3.bf16.msra.mxu0 %v505_v5  ;;  %496 = vmatpush3.bf16.msra.mxu1 %v505_v5 }
  0x14   :  { %462 = vmatprep.subr.bf16.mxu0 %v506_v7  ;;  %489 = vmatprep.subr.bf16.mxu1 %v506_v7 }
  0x17   :  { %463 = vmatpush3.bf16.msra.mxu0 %v506_v7  ;;  %497 = vmatpush3.bf16.msra.mxu1 %v506_v7 }
  0x18   :  { %464 = vmatprep.subr.bf16.mxu0 %v507_v8  ;;  %490 = vmatprep.subr.bf16.mxu1 %v507_v8 }
  0x1b   :  { %465 = vmatpush3.bf16.msra.mxu0 %v507_v8  ;;  %498 = vmatpush3.bf16.msra.mxu1 %v507_v8 }
  0x1c   :  { %466 = vmatprep.subr.bf16.mxu0 %v508_v9  ;;  %491 = vmatprep.subr.bf16.mxu1 %v508_v9 }
  0x1f   :  { %467 = vmatpush3.bf16.msra.mxu0 %v508_v9  ;;  %499 = vmatpush3.bf16.msra.mxu1 %v508_v9 }
  0x22   :  { %469 = vmatmul.mubr.bf16.vlgmr.msra.gmra.mrb[0].mxu0 %v510_v10  ;;  %477 = vmatmul.mubr.bf16.vlgmr.msra.gmra.mrb[0].mxu1 %v514_v11 }
  0x23   :  { %472 = vmatprep.mubr.bf16.mxu0 %v511_v12  ;;  %480 = vmatprep.mubr.bf16.mxu1 %v515_v13 }
  0x2a   :  { %473 = vmatmul.mubr.bf16.gmra.mrb[4].mxu0 %v512_v14  ;;  %481 = vmatmul.mubr.bf16.gmra.mrb[4].mxu1 %v516_v15 }
  0xf5   :  { %v470_v17 = vpop.f32.mrb[0].mxu0  ;;  %v478_v18 = vpop.f32.mrb[0].mxu1 }
  0xf6   :  { %334 = vst [vmem:[%s652_s2 + $0x10] sm:$0xff] %v470_v17  ;;  %v218_v19 = vpop.f32.mrb[1].mxu0  ;;  %342 = vst [vmem:[%s652_s2 + $0x50] sm:$0xff] %v478_v18  ;;  %v250_v20 = vpop.f32.mrb[1].mxu1  ;;  %v375_v28 = vmul.f32 %v470_v17, %v470_v17  ;;  %v383_v60 = vmul.f32 %v478_v18, %v478_v18 }
  0xf7   :  { %332 = vst [vmem:[%s652_s2] sm:$0xff] %v218_v19  ;;  %v471_v21 = vpop.f32.mrb[2].mxu0  ;;  %340 = vst [vmem:[%s652_s2 + $0x40] sm:$0xff] %v250_v20  ;;  %v479_v22 = vpop.f32.mrb[2].mxu1  ;;  %v373_v25 = vmul.f32 %v218_v19, %v218_v19  ;;  %v381_v54 = vmul.f32 %v250_v20, %v250_v20 }
  0xf8   :  { %335 = vst [vmem:[%s652_s2 + $0x18] sm:$0xff] %v471_v21  ;;  %v221_v23 = vpop.f32.mrb[3].mxu0  ;;  %343 = vst [vmem:[%s652_s2 + $0x58] sm:$0xff] %v479_v22  ;;  %v253_v24 = vpop.f32.mrb[3].mxu1  ;;  %v376_v31 = vmul.f32 %v471_v21, %v471_v21  ;;  %v384_v63 = vmul.f32 %v479_v22, %v479_v22 }
  0xf9   :  { %333 = vst [vmem:[%s652_s2 + $0x8] sm:$0xff] %v221_v23  ;;  %v349_v26 = vadd.f32 %v221_v23, %v218_v19  ;;  %v374_v27 = vmul.f32 %v221_v23, %v221_v23  ;;  %341 = vst [vmem:[%s652_s2 + $0x48] sm:$0xff] %v253_v24  ;;  %v382_v59 = vmul.f32 %v253_v24, %v253_v24 }
  0xfb   :  { %v350_v29 = vadd.f32 %v470_v17, %v349_v26  ;;  %v389_v30 = vadd.f32 %v374_v27, %v373_v25  ;;  %v372_v27 = vld [vmem:[%s651_s3 + $0x1] sm:$0x1] }
  0xfd   :  { %v390_v32 = vadd.f32 %v389_v30, %v375_v28  ;;  %v474_v33 = vpop.f32.mrb[4].mxu0  ;;  %v351_v34 = vadd.f32 %v471_v21, %v350_v29  ;;  %v482_v35 = vpop.f32.mrb[4].mxu1 }
  0xfe   :  { %338 = vst [vmem:[%s652_s2 + $0x30] sm:$0xff] %v474_v33  ;;  %v234_v36 = vpop.f32.mrb[5].mxu0  ;;  %346 = vst [vmem:[%s652_s2 + $0x70] sm:$0xff] %v482_v35  ;;  %v266_v37 = vpop.f32.mrb[5].mxu1  ;;  %v379_v48 = vmul.f32 %v474_v33, %v474_v33  ;;  %v387_v8 = vmul.f32 %v482_v35, %v482_v35 }
  0xff   :  { %336 = vst [vmem:[%s652_s2 + $0x20] sm:$0xff] %v234_v36  ;;  %v352_v38 = vadd.f32 %v351_v34, %v234_v36  ;;  %v377_v39 = vmul.f32 %v234_v36, %v234_v36  ;;  %v391_v40 = vadd.f32 %v390_v32, %v376_v31  ;;  %v475_v41 = vpop.f32.mrb[6].mxu0  ;;  %344 = vst [vmem:[%s652_s2 + $0x60] sm:$0xff] %v266_v37  ;;  %v483_v42 = vpop.f32.mrb[6].mxu1 }
 0x100   :  { %339 = vst [vmem:[%s652_s2 + $0x38] sm:$0xff] %v475_v41  ;;  %v237_v43 = vpop.f32.mrb[7].mxu0  ;;  %347 = vst [vmem:[%s652_s2 + $0x78] sm:$0xff] %v483_v42  ;;  %v269_v44 = vpop.f32.mrb[7].mxu1  ;;  %v380_v51 = vmul.f32 %v475_v41, %v475_v41  ;;  %v385_v2 = vmul.f32 %v266_v37, %v266_v37  ;;  %v388_v11 = vmul.f32 %v483_v42, %v483_v42 }
 0x101   :  { %v392_v45 = vadd.f32 %v391_v40, %v377_v39  ;;  %337 = vst [vmem:[%s652_s2 + $0x28] sm:$0xff] %v237_v43  ;;  %v353_v46 = vadd.f32 %v352_v38, %v237_v43  ;;  %v378_v47 = vmul.f32 %v237_v43, %v237_v43  ;;  %345 = vst [vmem:[%s652_s2 + $0x68] sm:$0xff] %v269_v44 }
 0x102   :  { %v386_v7 = vmul.f32 %v269_v44, %v269_v44 }
 0x103   :  { %v354_v49 = vadd.f32 %v474_v33, %v353_v46  ;;  %v393_v50 = vadd.f32 %v392_v45, %v378_v47 }
 0x105   :  { %v394_v52 = vadd.f32 %v393_v50, %v379_v48  ;;  %v355_v53 = vadd.f32 %v475_v41, %v354_v49 }
 0x107   :  { %v356_v55 = vadd.f32 %v355_v53, %v250_v20  ;;  %v395_v56 = vadd.f32 %v394_v52, %v380_v51 }
 0x109   :  { %v396_v57 = vadd.f32 %v395_v56, %v381_v54  ;;  %v357_v58 = vadd.f32 %v356_v55, %v253_v24  ;;  %v348_v24 = vld [vmem:[%s651_s3] sm:$0x1] }
 0x10b   :  { %v358_v61 = vadd.f32 %v478_v18, %v357_v58  ;;  %v397_v62 = vadd.f32 %v396_v57, %v382_v59 }
 0x10d   :  { %v398_v0 = vadd.f32 %v397_v62, %v383_v60  ;;  %v359_v1 = vadd.f32 %v479_v22, %v358_v61 }
 0x10f   :  { %v360_v3 = vadd.f32 %v359_v1, %v266_v37  ;;  %v399_v4 = vadd.f32 %v398_v0, %v384_v63 }
 0x111   :  { %v400_v5 = vadd.f32 %v399_v4, %v385_v2  ;;  %v361_v6 = vadd.f32 %v360_v3, %v269_v44 }
 0x113   :  { %v362_v9 = vadd.f32 %v482_v35, %v361_v6  ;;  %v401_v10 = vadd.f32 %v400_v5, %v386_v7 }
 0x115   :  { %v363_v12 = vadd.f32 %v483_v42, %v362_v9  ;;  %v402_v13 = vadd.f32 %v401_v10, %v387_v8 }
 0x117   :  { %v364_v14 = vrot.slane %v363_v12, 4  ;;  %v403_v15 = vadd.f32 %v402_v13, %v388_v11 }
 0x119   :  { %v365_v16 = vadd.f32 %v364_v14, %v363_v12  ;;  %v404_v17 = vrot.slane %v403_v15, 4 }
 0x11b   :  { %v366_v18 = vrot.slane %v365_v16, 2  ;;  %v405_v19 = vadd.f32 %v404_v17, %v403_v15 }
 0x11d   :  { %v367_v20 = vadd.f32 %v366_v18, %v365_v16  ;;  %v406_v21 = vrot.slane %v405_v19, 2 }
 0x11f   :  { %v368_v22 = vrot.slane %v367_v20, 1  ;;  %v407_v23 = vadd.f32 %v406_v21, %v405_v19 }
 0x121   :  { %v369_v25 = vadd.f32 %v368_v22, %v367_v20  ;;  %v408_v26 = vrot.slane %v407_v23, 1 }
 0x123   :  { %v370_v28 = vadd.f32 %v369_v25, %v348_v24  ;;  %v409_v29 = vadd.f32 %v408_v26, %v407_v23 }
 0x125   :  { %371 = vst [vmem:[%s651_s3] sm:$0x1] %v370_v28  ;;  %v410_v30 = vadd.f32 %v409_v29, %v372_v27 }
 0x127   :  { %411 = vst [vmem:[%s651_s3 + $0x1] sm:$0x1] %v410_v30 }

// kernel: feature_extractor_forward.9
= control target key start
LH: loop header
LB: loop body
LE: loop exit
PB: predicated region body
PF: predicated region fallthrough
CT: control target
= control target key end

     0   :  { %v47_v8 = vlaneseq  ;;  %s447_s1 = inlined_call_operand.vmem [shape: f32[2,128], index: 1, kind: input, shape index: {}]   ;;  %s448_s2 = inlined_call_operand.vmem [shape: f32[1,128], index: 2, kind: input, shape index: {}]   ;;  %s449_s0 = inlined_call_operand.vmem [shape: f32[128,128], index: 0, kind: input, shape index: {}]   ;;  %s450_s3 = inlined_call_operand.vmem [shape: f32[1,128], index: 3, kind: input, shape index: {}]   ;;  %s451_s4 = inlined_call_operand.vmem [shape: bf16[128,128], index: 4, kind: output, shape index: {}]  }
   0x1   :  { %v17_v0 = vld [vmem:[%s447_s1] sm:$0x1]  ;;  %v19_v1 = vld [vmem:[%s447_s1 + $0x1] sm:$0x1]  ;;  %v32_v16 = vld [vmem:[%s449_s0 + $0x8] sm:$0xff] }
   0x2   :  { %v18_v2 = vmul.f32 0.0078125, %v17_v0  ;;  %v20_v3 = vmul.f32 0.0078125, %v19_v1  ;;  %v48_v9 = vshrl.u32 %v47_v8, 7  ;;  %v26_v10 = vld [vmem:[%s448_s2] sm:$0x1]  ;;  %v33_v17 = vld [vmem:[%s449_s0 + $0x10] sm:$0xff] }
   0x3   :  { %v28_v14 = vld [vmem:[%s450_s3] sm:$0x1]  ;;  %v34_v18 = vld [vmem:[%s449_s0 + $0x18] sm:$0xff]  ;;  %v36_v22 = vld [vmem:[%s449_s0 + $0x28] sm:$0xff] }
   0x4   :  { %v21_v4 = vmul.f32 %v18_v2, %v18_v2  ;;  %v49_v11 = vsub.s32 0, %v48_v9  ;;  %v31_v15 = vld [vmem:[%s449_s0] sm:$0xff]  ;;  %v37_v23 = vld [vmem:[%s449_s0 + $0x30] sm:$0xff]  ;;  %v38_v24 = vld [vmem:[%s449_s0 + $0x38] sm:$0xff] }
   0x5   :  { %v35_v19 = vld [vmem:[%s449_s0 + $0x20] sm:$0xff]  ;;  %v40_v26 = vld [vmem:[%s449_s0 + $0x48] sm:$0xff]  ;;  %v41_v27 = vld [vmem:[%s449_s0 + $0x50] sm:$0xff] }
   0x6   :  { %v22_v5 = vsub.f32 %v20_v3, %v21_v4  ;;  %v39_v25 = vld [vmem:[%s449_s0 + $0x40] sm:$0xff]  ;;  %v42_v32 = vld [vmem:[%s449_s0 + $0x58] sm:$0xff]  ;;  %v44_v34 = vld [vmem:[%s449_s0 + $0x68] sm:$0xff] }
   0x7   :  { %v43_v33 = vld [vmem:[%s449_s0 + $0x60] sm:$0xff] }
   0x8   :  { %v23_v6 = vmax.f32 %v22_v5, 0.0 }
   0xa   :  { %v24_v7 = vadd.f32 1e-05, %v23_v6 }
   0xc   :  { %300 = vrsqrt.f32 %v24_v7 }
  0x16   :  { %v301_v12 = vpop.eup %300 }
  0x17   :  { %v27_v13 = vmul.f32 %v301_v12, %v26_v10 }
  0x19   :  { %v29_v20 = vmul.f32 %v27_v13, %v18_v2  ;;  %v354_v21 = vrot.slane %v27_v13, %v49_v11 }
  0x1b   :  { %v30_v28 = vsub.f32 %v28_v14, %v29_v20  ;;  %v51_v29 = vmul.f32 %v354_v21, %v31_v15  ;;  %v52_v30 = vmul.f32 %v354_v21, %v32_v16  ;;  %v53_v31 = vmul.f32 %v354_v21, %v33_v17  ;;  %v45_v17 = vld [vmem:[%s449_s0 + $0x70] sm:$0xff] }
  0x1c   :  { %v54_v35 = vmul.f32 %v354_v21, %v34_v18  ;;  %v55_v36 = vmul.f32 %v354_v21, %v35_v19  ;;  %v56_v37 = vmul.f32 %v354_v21, %v36_v22  ;;  %v57_v38 = vmul.f32 %v354_v21, %v37_v23 }
  0x1d   :  { %v390_v39 = vrot.slane %v30_v28, %v49_v11  ;;  %v58_v40 = vmul.f32 %v354_v21, %v38_v24  ;;  %v59_v41 = vmul.f32 %v354_v21, %v39_v25  ;;  %v60_v42 = vmul.f32 %v354_v21, %v40_v26  ;;  %v46_v25 = vld [vmem:[%s449_s0 + $0x78] sm:$0xff] }
  0x1e   :  { %v61_v43 = vmul.f32 %v354_v21, %v41_v27  ;;  %v62_v44 = vmul.f32 %v354_v21, %v42_v32  ;;  %v63_v45 = vmul.f32 %v354_v21, %v43_v33  ;;  %v64_v46 = vmul.f32 %v354_v21, %v44_v34 }
  0x1f   :  { %v73_v47 = vadd.f32 %v390_v39, %v51_v29  ;;  %v74_v48 = vadd.f32 %v390_v39, %v52_v30  ;;  %v75_v49 = vadd.f32 %v390_v39, %v53_v31  ;;  %v76_v50 = vadd.f32 %v390_v39, %v54_v35 }
  0x20   :  { %v77_v51 = vadd.f32 %v390_v39, %v55_v36  ;;  %v78_v52 = vadd.f32 %v390_v39, %v56_v37  ;;  %v79_v53 = vadd.f32 %v390_v39, %v57_v38  ;;  %v80_v54 = vadd.f32 %v390_v39, %v58_v40 }
  0x21   :  { %vm89_vm0 = vcmp.ge.f32.partialorder %v73_v47, 0.0  ;;  %vm90_vm1 = vcmp.ge.f32.partialorder %v74_v48, 0.0  ;;  %v105_v55 = vmul.f32 0.2, %v73_v47  ;;  %v106_v56 = vmul.f32 0.2, %v74_v48 }
  0x22   :  { %vm91_vm2 = vcmp.ge.f32.partialorder %v75_v49, 0.0  ;;  %vm92_vm3 = vcmp.ge.f32.partialorder %v76_v50, 0.0  ;;  %v107_v57 = vmul.f32 0.2, %v75_v49  ;;  %v108_v58 = vmul.f32 0.2, %v76_v50 }
  0x23   :  { %v121_v59 = vsel %vm89_vm0, %v73_v47, %v105_v55  ;;  %v122_v60 = vsel %vm90_vm1, %v74_v48, %v106_v56  ;;  %vm93_vm4 = vcmp.ge.f32.partialorder %v77_v51, 0.0  ;;  %vm94_vm5 = vcmp.ge.f32.partialorder %v78_v52, 0.0 }
  0x24   :  { %v256_v61 = vpack.c.bf16 %v122_v60, %v121_v59  ;;  %v123_v62 = vsel %vm91_vm2, %v75_v49, %v107_v57  ;;  %v124_v63 = vsel %vm92_vm3, %v76_v50, %v108_v58  ;;  %v109_v0 = vmul.f32 0.2, %v77_v51 }
  0x25   :  { %v261_v1 = vpack.c.bf16 %v124_v63, %v123_v62  ;;  %v110_v2 = vmul.f32 0.2, %v78_v52  ;;  %vm95_vm6 = vcmp.ge.f32.partialorder %v79_v53, 0.0  ;;  %vm96_vm7 = vcmp.ge.f32.partialorder %v80_v54, 0.0 }
  0x26   :  { %257 = vst [vmem:[%s451_s4] sm:$0xff] %v256_v61   ;;  %v125_v3 = vsel %vm93_vm4, %v77_v51, %v109_v0  ;;  %v111_v4 = vmul.f32 0.2, %v79_v53  ;;  %v112_v5 = vmul.f32 0.2, %v80_v54  ;;  %v81_v6 = vadd.f32 %v390_v39, %v59_v41 }
  0x27   :  { %293 = vst [vmem:[%s451_s4 + $0x8] sm:$0xff] %v261_v1   ;;  %v126_v7 = vsel %vm94_vm5, %v78_v52, %v110_v2  ;;  %v82_v8 = vadd.f32 %v390_v39, %v60_v42  ;;  %v83_v9 = vadd.f32 %v390_v39, %v61_v43  ;;  %v84_v10 = vadd.f32 %v390_v39, %v62_v44 }
  0x28   :  { %v266_v11 = vpack.c.bf16 %v126_v7, %v125_v3  ;;  %v127_v12 = vsel %vm95_vm6, %v79_v53, %v111_v4  ;;  %v128_v13 = vsel %vm96_vm7, %v80_v54, %v112_v5  ;;  %vm97_vm8 = vcmp.ge.f32.partialorder %v81_v6, 0.0 }
  0x29   :  { %v271_v14 = vpack.c.bf16 %v128_v13, %v127_v12  ;;  %vm98_vm9 = vcmp.ge.f32.partialorder %v82_v8, 0.0  ;;  %v113_v15 = vmul.f32 0.2, %v81_v6  ;;  %v114_v16 = vmul.f32 0.2, %v82_v8 }
  0x2a   :  { %294 = vst [vmem:[%s451_s4 + $0x10] sm:$0xff] %v266_v11   ;;  %vm99_vm10 = vcmp.ge.f32.partialorder %v83_v9, 0.0  ;;  %vm100_vm11 = vcmp.ge.f32.partialorder %v84_v10, 0.0  ;;  %v115_v18 = vmul.f32 0.2, %v83_v9  ;;  %v85_v23 = vadd.f32 %v390_v39, %v63_v45 }
  0x2b   :  { %v116_v19 = vmul.f32 0.2, %v84_v10  ;;  %295 = vst [vmem:[%s451_s4 + $0x18] sm:$0xff] %v271_v14   ;;  %v129_v20 = vsel %vm97_vm8, %v81_v6, %v113_v15  ;;  %v130_v22 = vsel %vm98_vm9, %v82_v8, %v114_v16  ;;  %v86_v24 = vadd.f32 %v390_v39, %v64_v46 }
  0x2c   :  { %v276_v26 = vpack.c.bf16 %v130_v22, %v129_v20  ;;  %v131_v27 = vsel %vm99_vm10, %v83_v9, %v115_v18  ;;  %v65_v29 = vmul.f32 %v354_v21, %v45_v17  ;;  %vm101_vm12 = vcmp.ge.f32.partialorder %v85_v23, 0.0 }
  0x2d   :  { %v132_v28 = vsel %vm100_vm11, %v84_v10, %v116_v19  ;;  %vm102_vm13 = vcmp.ge.f32.partialorder %v86_v24, 0.0  ;;  %v117_v31 = vmul.f32 0.2, %v85_v23  ;;  %v118_v32 = vmul.f32 0.2, %v86_v24 }
  0x2e   :  { %v281_v30 = vpack.c.bf16 %v132_v28, %v131_v27  ;;  %296 = vst [vmem:[%s451_s4 + $0x20] sm:$0xff] %v276_v26   ;;  %v66_v33 = vmul.f32 %v354_v21, %v46_v25  ;;  %v87_v34 = vadd.f32 %v390_v39, %v65_v29 }
  0x2f   :  { %v133_v35 = vsel %vm101_vm12, %v85_v23, %v117_v31  ;;  %v134_v36 = vsel %vm102_vm13, %v86_v24, %v118_v32 }
  0x30   :  { %297 = vst [vmem:[%s451_s4 + $0x28] sm:$0xff] %v281_v30   ;;  %v88_v37 = vadd.f32 %v390_v39, %v66_v33  ;;  %vm103_vm14 = vcmp.ge.f32.partialorder %v87_v34, 0.0  ;;  %v119_v38 = vmul.f32 0.2, %v87_v34  ;;  %v286_v40 = vpack.c.bf16 %v134_v36, %v133_v35 }
  0x32   :  { %vm104_vm15 = vcmp.ge.f32.partialorder %v88_v37, 0.0  ;;  %v120_v41 = vmul.f32 0.2, %v88_v37  ;;  %v135_v42 = vsel %vm103_vm14, %v87_v34, %v119_v38  ;;  %298 = vst [vmem:[%s451_s4 + $0x30] sm:$0xff] %v286_v40  }
  0x34   :  { %v136_v21 = vsel %vm104_vm15, %v88_v37, %v120_v41 }
  0x35   :  { %v291_v43 = vpack.c.bf16 %v136_v21, %v135_v42 }
  0x37   :  { %299 = vst [vmem:[%s451_s4 + $0x38] sm:$0xff] %v291_v43  }

// kernel: feature_extractor_forward.10
= control target key start
LH: loop header
LB: loop body
LE: loop exit
PB: predicated region body
PF: predicated region fallthrough
CT: control target
= control target key end

     0   :  { %v375_v20 = vmov 0.0   ;;  %s483_s1 = inlined_call_operand.vmem [shape: bf16[256,128], index: 1, kind: input, shape index: {}]   ;;  %s484_s0 = inlined_call_operand.vmem [shape: bf16[32,256], index: 0, kind: input, shape index: {}]   ;;  %s485_s3 = inlined_call_operand.vmem [shape: f32[2,128], index: 3, kind: output, shape index: {1}]   ;;  %s486_s2 = inlined_call_operand.vmem [shape: f32[32,128], index: 2, kind: output, shape index: {0}]  }
   0x1   :  { %v353_v0 = vld [vmem:[%s483_s1 + $0x40] sm:$0xff]   ;;  %v355_v2 = vld [vmem:[%s483_s1 + $0x48] sm:$0xff]   ;;  %v357_v4 = vld [vmem:[%s483_s1 + $0x50] sm:$0xff]   ;;  %27 = vst [vmem:[%s485_s3] sm:$0x3] %v375_v20 }
   0x2   :  { %v354_v1 = vld [vmem:[%s483_s1] sm:$0xff]   ;;  %308 = vmatprep.subr.bf16.mxu0 %v353_v0  ;;  %336 = vmatprep.subr.bf16.mxu1 %v353_v0  ;;  %v356_v3 = vld [vmem:[%s483_s1 + $0x8] sm:$0xff]   ;;  %v358_v5 = vld [vmem:[%s483_s1 + $0x10] sm:$0xff]  }
   0x3   :  { %309 = vmatpush3.bf16.msra.mxu0 %v354_v1  ;;  %344 = vmatpush3.bf16.msra.mxu1 %v354_v1  ;;  %v359_v6 = vld [vmem:[%s483_s1 + $0x58] sm:$0xff]   ;;  %v361_v8 = vld [vmem:[%s483_s1 + $0x60] sm:$0xff]   ;;  %v363_v10 = vld [vmem:[%s483_s1 + $0x68] sm:$0xff]  }
   0x4   :  { %310 = vmatprep.subr.bf16.mxu0 %v355_v2  ;;  %337 = vmatprep.subr.bf16.mxu1 %v355_v2  ;;  %v360_v7 = vld [vmem:[%s483_s1 + $0x18] sm:$0xff]   ;;  %v362_v9 = vld [vmem:[%s483_s1 + $0x20] sm:$0xff]   ;;  %v364_v13 = vld [vmem:[%s483_s1 + $0x28] sm:$0xff]  }
   0x5   :  { %v371_v11 = vld [vmem:[%s484_s0 + $0x4] ss:$8 sps:$4 sm:$0xff]   ;;  %v374_v12 = vld [vmem:[%s484_s0 + $0x14] ss:$8 sps:$4 sm:$0xff]   ;;  %v369_v18 = vld [vmem:[%s484_s0] ss:$8 sps:$4 sm:$0xff]  }
   0x6   :  { %v365_v14 = vld [vmem:[%s483_s1 + $0x70] sm:$0xff]   ;;  %216 = vmatprep.mubr.bf16.mxu0 %v371_v11  ;;  %224 = vmatprep.mubr.bf16.mxu1 %v374_v12  ;;  %v367_v16 = vld [vmem:[%s483_s1 + $0x78] sm:$0xff]  }
   0x7   :  { %311 = vmatpush3.bf16.msra.mxu0 %v356_v3  ;;  %345 = vmatpush3.bf16.msra.mxu1 %v356_v3  ;;  %v366_v15 = vld [vmem:[%s483_s1 + $0x30] sm:$0xff]   ;;  %v368_v17 = vld [vmem:[%s483_s1 + $0x38] sm:$0xff]  }
   0x8   :  { %312 = vmatprep.subr.bf16.mxu0 %v357_v4  ;;  %338 = vmatprep.subr.bf16.mxu1 %v357_v4  ;;  %v372_v19 = vld [vmem:[%s484_s0 + $0x10] ss:$8 sps:$4 sm:$0xff]   ;;  %v252_v52 = vld [vmem:[%s485_s3] sm:$0x1]  ;;  %v264_v55 = vld [vmem:[%s485_s3 + $0x1] sm:$0x1] }
   0xb   :  { %313 = vmatpush3.bf16.msra.mxu0 %v358_v5  ;;  %346 = vmatpush3.bf16.msra.mxu1 %v358_v5 }
   0xc   :  { %314 = vmatprep.subr.bf16.mxu0 %v359_v6  ;;  %339 = vmatprep.subr.bf16.mxu1 %v359_v6 }
   0xf   :  { %315 = vmatpush3.bf16.msra.mxu0 %v360_v7  ;;  %347 = vmatpush3.bf16.msra.mxu1 %v360_v7 }
  0x10   :  { %316 = vmatprep.subr.bf16.mxu0 %v361_v8  ;;  %340 = vmatprep.subr.bf16.mxu1 %v361_v8 }
  0x13   :  { %317 = vmatpush3.bf16.msra.mxu0 %v362_v9  ;;  %348 = vmatpush3.bf16.msra.mxu1 %v362_v9 }
  0x14   :  { %318 = vmatprep.subr.bf16.mxu0 %v363_v10  ;;  %341 = vmatprep.subr.bf16.mxu1 %v363_v10 }
  0x17   :  { %319 = vmatpush3.bf16.msra.mxu0 %v364_v13  ;;  %349 = vmatpush3.bf16.msra.mxu1 %v364_v13 }
  0x18   :  { %320 = vmatprep.subr.bf16.mxu0 %v365_v14  ;;  %342 = vmatprep.subr.bf16.mxu1 %v365_v14 }
  0x1b   :  { %321 = vmatpush3.bf16.msra.mxu0 %v366_v15  ;;  %350 = vmatpush3.bf16.msra.mxu1 %v366_v15 }
  0x1c   :  { %322 = vmatprep.subr.bf16.mxu0 %v367_v16  ;;  %343 = vmatprep.subr.bf16.mxu1 %v367_v16 }
  0x1f   :  { %323 = vmatpush3.bf16.msra.mxu0 %v368_v17  ;;  %351 = vmatpush3.bf16.msra.mxu1 %v368_v17 }
  0x22   :  { %217 = vmatmul.mubr.bf16.vlgmr.msra.gmra.mrb[0].mxu0 %v369_v18  ;;  %225 = vmatmul.mubr.bf16.vlgmr.msra.gmra.mrb[0].mxu1 %v372_v19 }
  0xf5   :  { %v324_v21 = vpop.f32.mrb[0].mxu0  ;;  %v330_v22 = vpop.f32.mrb[0].mxu1 }
  0xf6   :  { %v325_v23 = vpop.f32.mrb[1].mxu0  ;;  %v331_v24 = vpop.f32.mrb[1].mxu1 }
  0xf7   :  { %v326_v25 = vadd.f32 %v325_v23, %v324_v21  ;;  %v327_v26 = vpop.f32.mrb[2].mxu0  ;;  %v332_v27 = vadd.f32 %v331_v24, %v330_v22  ;;  %v333_v28 = vpop.f32.mrb[2].mxu1 }
  0xf8   :  { %v328_v29 = vpop.f32.mrb[3].mxu0  ;;  %v334_v30 = vpop.f32.mrb[3].mxu1 }
  0xf9   :  { %248 = vst [vmem:[%s486_s2] sm:$0xff] %v326_v25  ;;  %250 = vst [vmem:[%s486_s2 + $0x10] sm:$0xff] %v332_v27  ;;  %v329_v31 = vadd.f32 %v328_v29, %v327_v26  ;;  %v335_v32 = vadd.f32 %v334_v30, %v333_v28  ;;  %v265_v33 = vmul.f32 %v326_v25, %v326_v25 }
  0xfa   :  { %v267_v34 = vmul.f32 %v332_v27, %v332_v27 }
  0xfb   :  { %249 = vst [vmem:[%s486_s2 + $0x8] sm:$0xff] %v329_v31  ;;  %v253_v35 = vadd.f32 %v329_v31, %v326_v25  ;;  %v266_v36 = vmul.f32 %v329_v31, %v329_v31  ;;  %251 = vst [vmem:[%s486_s2 + $0x18] sm:$0xff] %v335_v32  ;;  %v268_v40 = vmul.f32 %v335_v32, %v335_v32 }
  0xfd   :  { %v269_v37 = vadd.f32 %v266_v36, %v265_v33  ;;  %v254_v38 = vadd.f32 %v332_v27, %v253_v35 }
  0xff   :  { %v255_v39 = vadd.f32 %v335_v32, %v254_v38  ;;  %v270_v41 = vadd.f32 %v269_v37, %v267_v34 }
 0x101   :  { %v256_v42 = vrot.slane %v255_v39, 4  ;;  %v271_v43 = vadd.f32 %v270_v41, %v268_v40 }
 0x103   :  { %v257_v44 = vadd.f32 %v256_v42, %v255_v39  ;;  %v272_v45 = vrot.slane %v271_v43, 4 }
 0x105   :  { %v258_v46 = vrot.slane %v257_v44, 2  ;;  %v273_v47 = vadd.f32 %v272_v45, %v271_v43 }
 0x107   :  { %v259_v48 = vadd.f32 %v258_v46, %v257_v44  ;;  %v274_v49 = vrot.slane %v273_v47, 2 }
 0x109   :  { %v260_v50 = vrot.slane %v259_v48, 1  ;;  %v275_v51 = vadd.f32 %v274_v49, %v273_v47 }
 0x10b   :  { %v261_v53 = vadd.f32 %v260_v50, %v259_v48  ;;  %v276_v54 = vrot.slane %v275_v51, 1 }
 0x10d   :  { %v262_v56 = vadd.f32 %v261_v53, %v252_v52  ;;  %v277_v57 = vadd.f32 %v276_v54, %v275_v51 }
 0x10f   :  { %263 = vst [vmem:[%s485_s3] sm:$0x1] %v262_v56  ;;  %v278_v58 = vadd.f32 %v277_v57, %v264_v55 }
 0x111   :  { %279 = vst [vmem:[%s485_s3 + $0x1] sm:$0x1] %v278_v58 }

// kernel: feature_extractor_forward.11
= control target key start
LH: loop header
LB: loop body
LE: loop exit
PB: predicated region body
PF: predicated region fallthrough
CT: control target
= control target key end

     0   :  { %v35_v8 = vlaneseq  ;;  %s165_s1 = inlined_call_operand.vmem [shape: f32[2,128], index: 1, kind: input, shape index: {}]   ;;  %s166_s2 = inlined_call_operand.vmem [shape: f32[1,128], index: 2, kind: input, shape index: {}]   ;;  %s167_s3 = inlined_call_operand.vmem [shape: f32[1,128], index: 3, kind: input, shape index: {}]   ;;  %s168_s0 = inlined_call_operand.vmem [shape: f32[32,128], index: 0, kind: input, shape index: {}]   ;;  %s169_s4 = inlined_call_operand.vmem [shape: bf16[32,128], index: 4, kind: output, shape index: {}]  }
   0x1   :  { %v17_v0 = vld [vmem:[%s165_s1] sm:$0x1]  ;;  %v19_v1 = vld [vmem:[%s165_s1 + $0x1] sm:$0x1]  ;;  %v32_v16 = vld [vmem:[%s168_s0 + $0x8] sm:$0xff] }
   0x2   :  { %v18_v2 = vmul.f32 0.03125, %v17_v0  ;;  %v20_v3 = vmul.f32 0.03125, %v19_v1  ;;  %v36_v9 = vshrl.u32 %v35_v8, 7  ;;  %v26_v10 = vld [vmem:[%s166_s2] sm:$0x1]  ;;  %v33_v17 = vld [vmem:[%s168_s0 + $0x10] sm:$0xff] }
   0x3   :  { %v28_v14 = vld [vmem:[%s167_s3] sm:$0x1]  ;;  %v34_v20 = vld [vmem:[%s168_s0 + $0x18] sm:$0xff] }
   0x4   :  { %v21_v4 = vmul.f32 %v18_v2, %v18_v2  ;;  %v37_v11 = vsub.s32 0, %v36_v9  ;;  %v31_v15 = vld [vmem:[%s168_s0] sm:$0xff] }
   0x6   :  { %v22_v5 = vsub.f32 %v20_v3, %v21_v4 }
   0x8   :  { %v23_v6 = vmax.f32 %v22_v5, 0.0 }
   0xa   :  { %v24_v7 = vadd.f32 1e-05, %v23_v6 }
   0xc   :  { %108 = vrsqrt.f32 %v24_v7 }
  0x16   :  { %v109_v12 = vpop.eup %108 }
  0x17   :  { %v27_v13 = vmul.f32 %v109_v12, %v26_v10 }
  0x19   :  { %v29_v18 = vmul.f32 %v27_v13, %v18_v2  ;;  %v38_v19 = vrot.slane %v27_v13, %v37_v11 }
  0x1b   :  { %v30_v21 = vsub.f32 %v28_v14, %v29_v18  ;;  %v39_v22 = vmul.f32 %v38_v19, %v31_v15  ;;  %v40_v23 = vmul.f32 %v38_v19, %v32_v16  ;;  %v41_v24 = vmul.f32 %v38_v19, %v33_v17 }
  0x1c   :  { %v42_v25 = vmul.f32 %v38_v19, %v34_v20 }
  0x1d   :  { %v47_v26 = vrot.slane %v30_v21, %v37_v11 }
  0x1f   :  { %v49_v27 = vadd.f32 %v47_v26, %v39_v22  ;;  %v50_v28 = vadd.f32 %v47_v26, %v40_v23  ;;  %v51_v29 = vadd.f32 %v47_v26, %v41_v24  ;;  %v52_v30 = vadd.f32 %v47_v26, %v42_v25 }
  0x21   :  { %vm53_vm0 = vcmp.ge.f32.partialorder %v49_v27, 0.0  ;;  %vm54_vm1 = vcmp.ge.f32.partialorder %v50_v28, 0.0  ;;  %v57_v31 = vmul.f32 0.2, %v49_v27  ;;  %v58_v32 = vmul.f32 0.2, %v50_v28 }
  0x22   :  { %vm55_vm2 = vcmp.ge.f32.partialorder %v51_v29, 0.0  ;;  %vm56_vm3 = vcmp.ge.f32.partialorder %v52_v30, 0.0  ;;  %v59_v33 = vmul.f32 0.2, %v51_v29  ;;  %v60_v34 = vmul.f32 0.2, %v52_v30 }
  0x23   :  { %v61_v35 = vsel %vm53_vm0, %v49_v27, %v57_v31  ;;  %v62_v36 = vsel %vm54_vm1, %v50_v28, %v58_v32 }
  0x24   :  { %v100_v37 = vpack.c.bf16 %v62_v36, %v61_v35  ;;  %v63_v38 = vsel %vm55_vm2, %v51_v29, %v59_v33  ;;  %v64_v39 = vsel %vm56_vm3, %v52_v30, %v60_v34 }
  0x25   :  { %v105_v40 = vpack.c.bf16 %v64_v39, %v63_v38 }
  0x26   :  { %101 = vst [vmem:[%s169_s4] sm:$0xff] %v100_v37  }
  0x27   :  { %107 = vst [vmem:[%s169_s4 + $0x8] sm:$0xff] %v105_v40  }

// kernel: feature_extractor_forward.12
= control target key start
LH: loop header
LB: loop body
LE: loop exit
PB: predicated region body
PF: predicated region fallthrough
CT: control target
= control target key end

     0   :  { %v529_v38 = vmov 0.0   ;;  %s670_s1 = inlined_call_operand.vmem [shape: bf16[512,128], index: 1, kind: input, shape index: {}]   ;;  %s671_s0 = inlined_call_operand.vmem [shape: bf16[8,512], index: 0, kind: input, shape index: {}]   ;;  %s672_s3 = inlined_call_operand.vmem [shape: f32[2,128], index: 3, kind: output, shape index: {1}]   ;;  %s673_s2 = inlined_call_operand.vmem [shape: f32[8,128], index: 2, kind: output, shape index: {0}]  }
   0x1   :  { %v493_v0 = vld [vmem:[%s670_s1 + $0x40] sm:$0xff]   ;;  %v497_v4 = vld [vmem:[%s670_s1 + $0x48] sm:$0xff]   ;;  %v501_v8 = vld [vmem:[%s670_s1 + $0x50] sm:$0xff]   ;;  %24 = vst [vmem:[%s672_s3] sm:$0x3] %v529_v38 }
   0x2   :  { %v494_v1 = vld [vmem:[%s670_s1 + $0xc0] sm:$0xff]   ;;  %448 = vmatprep.subr.bf16.mxu0 %v493_v0  ;;  %v498_v5 = vld [vmem:[%s670_s1 + $0xc8] sm:$0xff]   ;;  %v502_v9 = vld [vmem:[%s670_s1 + $0xd0] sm:$0xff]  }
   0x3   :  { %v495_v2 = vld [vmem:[%s670_s1] sm:$0xff]   ;;  %470 = vmatprep.subr.bf16.mxu1 %v494_v1  ;;  %v499_v6 = vld [vmem:[%s670_s1 + $0x8] sm:$0xff]   ;;  %v503_v10 = vld [vmem:[%s670_s1 + $0x10] sm:$0xff]  }
   0x4   :  { %v496_v3 = vld [vmem:[%s670_s1 + $0x80] sm:$0xff]   ;;  %449 = vmatpush3.bf16.msra.mxu0 %v495_v2  ;;  %v500_v7 = vld [vmem:[%s670_s1 + $0x88] sm:$0xff]   ;;  %v504_v11 = vld [vmem:[%s670_s1 + $0x90] sm:$0xff]  }
   0x5   :  { %471 = vmatpush3.bf16.msra.mxu1 %v496_v3  ;;  %450 = vmatprep.subr.bf16.mxu0 %v497_v4  ;;  %v505_v12 = vld [vmem:[%s670_s1 + $0x58] sm:$0xff]   ;;  %v509_v16 = vld [vmem:[%s670_s1 + $0x60] sm:$0xff]   ;;  %v513_v20 = vld [vmem:[%s670_s1 + $0x68] sm:$0xff]  }
   0x6   :  { %472 = vmatprep.subr.bf16.mxu1 %v498_v5  ;;  %v506_v13 = vld [vmem:[%s670_s1 + $0xd8] sm:$0xff]   ;;  %v510_v17 = vld [vmem:[%s670_s1 + $0xe0] sm:$0xff]   ;;  %v514_v21 = vld [vmem:[%s670_s1 + $0xe8] sm:$0xff]  }
   0x7   :  { %v507_v14 = vld [vmem:[%s670_s1 + $0x18] sm:$0xff]   ;;  %v511_v18 = vld [vmem:[%s670_s1 + $0x20] sm:$0xff]   ;;  %v515_v22 = vld [vmem:[%s670_s1 + $0x28] sm:$0xff]  }
   0x8   :  { %451 = vmatpush3.bf16.msra.mxu0 %v499_v6  ;;  %v508_v15 = vld [vmem:[%s670_s1 + $0x98] sm:$0xff]   ;;  %v512_v19 = vld [vmem:[%s670_s1 + $0xa0] sm:$0xff]   ;;  %v516_v23 = vld [vmem:[%s670_s1 + $0xa8] sm:$0xff]  }
   0x9   :  { %473 = vmatpush3.bf16.msra.mxu1 %v500_v7  ;;  %452 = vmatprep.subr.bf16.mxu0 %v501_v8  ;;  %v517_v24 = vld [vmem:[%s670_s1 + $0x70] sm:$0xff]   ;;  %v521_v28 = vld [vmem:[%s670_s1 + $0x78] sm:$0xff]   ;;  %v26_v32 = vld [vmem:[%s671_s0] sm:$0xff] }
   0xa   :  { %474 = vmatprep.subr.bf16.mxu1 %v502_v9  ;;  %v518_v25 = vld [vmem:[%s670_s1 + $0xf0] sm:$0xff]   ;;  %v522_v29 = vld [vmem:[%s670_s1 + $0xf8] sm:$0xff]   ;;  %v27_v33 = vld [vmem:[%s671_s0 + $0x8] sm:$0xff]  ;;  %v412_v34 = vcombine.low %v26_v32, %v26_v32  ;;  %v413_v35 = vcombine.high %v26_v32, %v26_v32 }
   0xb   :  { %v519_v26 = vld [vmem:[%s670_s1 + $0x30] sm:$0xff]   ;;  %v523_v30 = vld [vmem:[%s670_s1 + $0x38] sm:$0xff]   ;;  %v414_v36 = vcombine.low %v27_v33, %v27_v33  ;;  %v415_v37 = vcombine.high %v27_v33, %v27_v33  ;;  %v385_v60 = vld [vmem:[%s672_s3] sm:$0x1] }
   0xc   :  { %453 = vmatpush3.bf16.msra.mxu0 %v503_v10  ;;  %v520_v27 = vld [vmem:[%s670_s1 + $0xb0] sm:$0xff]   ;;  %v524_v31 = vld [vmem:[%s670_s1 + $0xb8] sm:$0xff]   ;;  %330 = vmatprep.mubr.bf16.mxu0 %v413_v35  ;;  %v394_v63 = vld [vmem:[%s672_s3 + $0x1] sm:$0x1] }
   0xd   :  { %475 = vmatpush3.bf16.msra.mxu1 %v504_v11  ;;  %454 = vmatprep.subr.bf16.mxu0 %v505_v12 }
   0xe   :  { %476 = vmatprep.subr.bf16.mxu1 %v506_v13  ;;  %370 = vmatprep.mubr.bf16.mxu1 %v415_v37 }
  0x10   :  { %455 = vmatpush3.bf16.msra.mxu0 %v507_v14 }
  0x11   :  { %477 = vmatpush3.bf16.msra.mxu1 %v508_v15  ;;  %456 = vmatprep.subr.bf16.mxu0 %v509_v16 }
  0x12   :  { %478 = vmatprep.subr.bf16.mxu1 %v510_v17 }
  0x14   :  { %457 = vmatpush3.bf16.msra.mxu0 %v511_v18 }
  0x15   :  { %479 = vmatpush3.bf16.msra.mxu1 %v512_v19  ;;  %458 = vmatprep.subr.bf16.mxu0 %v513_v20 }
  0x16   :  { %480 = vmatprep.subr.bf16.mxu1 %v514_v21 }
  0x18   :  { %459 = vmatpush3.bf16.msra.mxu0 %v515_v22 }
  0x19   :  { %481 = vmatpush3.bf16.msra.mxu1 %v516_v23  ;;  %460 = vmatprep.subr.bf16.mxu0 %v517_v24 }
  0x1a   :  { %482 = vmatprep.subr.bf16.mxu1 %v518_v25 }
  0x1c   :  { %461 = vmatpush3.bf16.msra.mxu0 %v519_v26 }
  0x1d   :  { %483 = vmatpush3.bf16.msra.mxu1 %v520_v27  ;;  %462 = vmatprep.subr.bf16.mxu0 %v521_v28 }
  0x1e   :  { %484 = vmatprep.subr.bf16.mxu1 %v522_v29 }
  0x20   :  { %463 = vmatpush3.bf16.msra.mxu0 %v523_v30 }
  0x21   :  { %485 = vmatpush3.bf16.msra.mxu1 %v524_v31 }
  0x23   :  { %331 = vmatmul.mubr.bf16.vlgmr.msra.gmra.mrb[0].mxu0 %v412_v34 }
  0x24   :  { %371 = vmatmul.mubr.bf16.vlgmr.msra.gmra.mrb[0].mxu1 %v414_v36 }
  0xf6   :  { %v464_v39 = vpop.f32.mrb[0].mxu0 }
  0xf7   :  { %v486_v40 = vpop.f32.mrb[0].mxu1  ;;  %v465_v41 = vpop.f32.mrb[1].mxu0 }
  0xf8   :  { %v487_v42 = vpop.f32.mrb[1].mxu1  ;;  %v466_v43 = vadd.f32 %v465_v41, %v464_v39  ;;  %v467_v45 = vpop.f32.mrb[2].mxu0 }
  0xf9   :  { %v488_v44 = vadd.f32 %v487_v42, %v486_v40  ;;  %v489_v46 = vpop.f32.mrb[2].mxu1  ;;  %v468_v47 = vpop.f32.mrb[3].mxu0 }
  0xfa   :  { %v490_v48 = vpop.f32.mrb[3].mxu1 }
  0xfb   :  { %v373_v49 = vadd.f32 %v488_v44, %v466_v43 }
  0xfd   :  { %384 = vst [vmem:[%s673_s2] sm:$0xff] %v373_v49  ;;  %v386_v50 = vrot.slane %v373_v49, 4  ;;  %v395_v51 = vmul.f32 %v373_v49, %v373_v49 }
  0xff   :  { %v387_v52 = vadd.f32 %v386_v50, %v373_v49  ;;  %v396_v53 = vrot.slane %v395_v51, 4 }
 0x101   :  { %v388_v54 = vrot.slane %v387_v52, 2  ;;  %v397_v55 = vadd.f32 %v396_v53, %v395_v51 }
 0x103   :  { %v389_v56 = vadd.f32 %v388_v54, %v387_v52  ;;  %v398_v57 = vrot.slane %v397_v55, 2 }
 0x105   :  { %v390_v58 = vrot.slane %v389_v56, 1  ;;  %v399_v59 = vadd.f32 %v398_v57, %v397_v55 }
 0x107   :  { %v391_v61 = vadd.f32 %v390_v58, %v389_v56  ;;  %v400_v62 = vrot.slane %v399_v59, 1 }
 0x109   :  { %v392_v0 = vadd.f32 %v391_v61, %v385_v60  ;;  %v401_v1 = vadd.f32 %v400_v62, %v399_v59 }
 0x10b   :  { %393 = vst [vmem:[%s672_s3] sm:$0x1] %v392_v0  ;;  %v402_v2 = vadd.f32 %v401_v1, %v394_v63 }
 0x10d   :  { %403 = vst [vmem:[%s672_s3 + $0x1] sm:$0x1] %v402_v2 }

// kernel: feature_extractor_forward.13
= control target key start
LH: loop header
LB: loop body
LE: loop exit
PB: predicated region body
PF: predicated region fallthrough
CT: control target
= control target key end

     0   :  { %s143_s0 = inlined_call_operand.vmem [shape: f32[8,128], index: 0, kind: input, shape index: {}]   ;;  %s144_s1 = inlined_call_operand.vmem [shape: f32[2,128], index: 1, kind: input, shape index: {}]   ;;  %s145_s2 = inlined_call_operand.vmem [shape: f32[1,128], index: 2, kind: input, shape index: {}]   ;;  %s146_s3 = inlined_call_operand.vmem [shape: f32[1,128], index: 3, kind: input, shape index: {}]   ;;  %s147_s4 = inlined_call_operand.hbm [shape: f32[8,128], index: 4, kind: output, shape index: {}]  }
   0x1   :  { %v18_v0 = vld [vmem:[%s144_s1] sm:$0x1]  ;;  %v20_v1 = vld [vmem:[%s144_s1 + $0x1] sm:$0x1] }
   0x2   :  { %v19_v2 = vmul.f32 0.125, %v18_v0  ;;  %v21_v3 = vmul.f32 0.125, %v20_v1 }
   0x3   :  { %9 = vsyncpa [#allocation3], 0  ;;  %v33_v8 = vlaneseq  ;;  %v27_v10 = vld [vmem:[%s145_s2] sm:$0x1]  ;;  %s90_s24 = smov [#allocation2]  }
   0x4   :  { %v22_v4 = vmul.f32 %v19_v2, %v19_v2  ;;  %v29_v14 = vld [vmem:[%s146_s3] sm:$0x1]  ;;  %s55_s25 = sshll.u32 %s90_s24, 4  ;;  %s56_s25 = int_to_ptr.vmem [resolvable:$true] %s55_s25 }
   0x5   :  { %v34_v9 = vshrl.u32 %v33_v8, 7  ;;  %v32_v15 = vld [vmem:[%s143_s0] sm:$0xff]  ;;  %s66_s2 = scalar_lea.vmem %s56_s25, 128  ;;  %p71_p1 = scmp.lt.s32.totalorder %s56_s25, %s56_s25 }
   0x6   :  { %v23_v5 = vsub.f32 %v21_v3, %v22_v4  ;;  %p67_p0 = scmp.ne.s32.totalorder %s56_s25, %s66_s2  ;;  %p72_p2 = scmp.lt.s32.totalorder %s66_s2, %s66_s2 }
   0x7   :  { %v35_v11 = vsub.s32 0, %v34_v9 }
   0x8   :  { %v24_v6 = vmax.f32 %v23_v5, 0.0  ;;  %p73_p3 = por %p72_p2, %p71_p1 }
   0xa   :  { %v25_v7 = vadd.f32 1e-05, %v24_v6  ;;  %p74_p4 = pnand %p73_p3, %p67_p0 }
   0xc   :  { %64 = vrsqrt.f32 %v25_v7 }
  0x16   :  { %v65_v12 = vpop.eup %64 }
  0x17   :  { %v28_v13 = vmul.f32 %v65_v12, %v27_v10 }
  0x19   :  { %v30_v16 = vmul.f32 %v28_v13, %v19_v2  ;;  %v36_v17 = vrot.slane %v28_v13, %v35_v11 }
  0x1b   :  { %v31_v18 = vsub.f32 %v29_v14, %v30_v16  ;;  %v37_v19 = vmul.f32 %v36_v17, %v32_v15 }
  0x1d   :  { %v42_v20 = vrot.slane %v31_v18, %v35_v11 }
  0x1f   :  { %v44_v21 = vadd.f32 %v42_v20, %v37_v19 }
  0x21   :  { %vm45_vm0 = vcmp.ge.f32.partialorder %v44_v21, 0.0  ;;  %v46_v22 = vmul.f32 0.2, %v44_v21 }
  0x23   :  { %v47_v23 = vsel %vm45_vm0, %v44_v21, %v46_v22 }
  0x24   :  { %48 = vst [vmem:[#allocation2] sm:$0xff] %v47_v23 }
  0x25   :  { %77 = shalt.err (!%p74_p4)
}
  0x26   :  { %s78_s26 = scalar_lea.hbm %s147_s4, 128 }
  0x27   :  { %p79_p5 = scmp.ne.s32.totalorder %s147_s4, %s78_s26  ;;  %p82_p6 = scmp.lt.u32.totalorder %s78_s26, %s147_s4 }
  0x29   :  { %p84_p7 = pnand %p82_p6, %p79_p5 }
  0x2b   :  { %87 = shalt.err (!%p84_p7)
}
  0x2c   :  { %58 = dma.vmem_to_hbm [thread:$0]  %s56_s25, 128, %s147_s4, [#allocation3]  }
  0x2d   :  { %88 = dma.done.wait [#allocation3], 128  }
  0x2e   :  { %89 = vsyncadd [#allocation3], 4294967168 }
  0x2f   :  { %62 = vsyncpa [#allocation3], 1 }

</bundles_post_ra>
